<compile_context>
chip_gen: v7x
topology: tpu7x:2x2x1
jax: 0.10.0
libtpu: 0.0.40
codegen_flags: <defaults>
</compile_context>

<pallas_src>
import functools

import jax
import jax.numpy as jnp
from jax.experimental import pallas as pl
from jax.experimental.pallas import tpu as pltpu

EPS = 1e-5
K = 3  # kernel size


def _residual_block_kernel(x_ref, w1_ref, w2_ref, p_ref, out_ref, pad_ref, *,
                           n_ch, width):
    # x_ref   : (N, H, L)        lane-dense fused input, L = W*C
    # w*_ref  : (3*L, L)         fused block-sparse conv weights
    # p_ref   : (6, L)           lane-tiled [b1, g1, be1, b2, g2, be2]
    # out_ref : (N, H, L)
    # pad_ref : (N, H+2, L)      VMEM scratch (H zero-padding for both convs)
    N, H, L = x_ref.shape
    C, W = n_ch, width
    inv_m = 1.0 / float(N * H * W)

    # lane<->channel fold / broadcast matrices (lane j holds channel j % C)
    lane_f = jax.lax.broadcasted_iota(jnp.int32, (L, C), 0)
    ch_f = jax.lax.broadcasted_iota(jnp.int32, (L, C), 1)
    fold = (lane_f % C == ch_f).astype(jnp.float32)        # (L, C) lanes -> channels
    lane_b = jax.lax.broadcasted_iota(jnp.int32, (C, L), 1)
    ch_b = jax.lax.broadcasted_iota(jnp.int32, (C, L), 0)
    bcast = (lane_b % C == ch_b).astype(jnp.float32)       # (C, L) channels -> lanes

    p = p_ref[...]
    b1_l, g1_l, be1_l = p[0:1], p[1:2], p[2:3]
    b2_l, g2_l, be2_l = p[3:4], p[4:5], p[5:6]

    # Zero the H-padded scratch once; only rows 1..H are written afterwards, so
    # the two zero border rows provide padding=1 in H for both convolutions.
    pad_ref[...] = jnp.zeros((N, H + 2, L), jnp.float32)

    x = x_ref[...].astype(jnp.float32)                     # (N, H, L)

    def conv3x3(w_ref, bias_l):
        # Rows h-1 / h / h+1 concatenated on the 128-aligned lane axis -> one
        # deep matmul (contraction 3*L).  W-direction taps + channel mixing are
        # encoded in the fused block-sparse weight; W-boundary taps are simply
        # absent from the weight (equivalent to zero padding in W).
        padv = pad_ref[...]
        patches = jnp.concatenate(
            [padv[:, 0:H, :], padv[:, 1:H + 1, :], padv[:, 2:H + 2, :]],
            axis=-1).reshape(N * H, 3 * L)
        return jnp.dot(patches, w_ref[...],
                       preferred_element_type=jnp.float32) + bias_l

    def batchnorm(y, g_l, be_l):
        # One-pass training-mode batch statistics (sum + sum of squares),
        # biased variance, eps=1e-5.  y: (N*H, L).
        s = jnp.sum(y, axis=0, keepdims=True)              # (1, L)
        ss = jnp.sum(y * y, axis=0, keepdims=True)         # (1, L)
        mean_c = jnp.dot(s, fold, preferred_element_type=jnp.float32) * inv_m
        ex2_c = jnp.dot(ss, fold, preferred_element_type=jnp.float32) * inv_m
        var_c = ex2_c - mean_c * mean_c
        mean_l = jnp.dot(mean_c, bcast, preferred_element_type=jnp.float32)
        var_l = jnp.dot(var_c, bcast, preferred_element_type=jnp.float32)
        scale_l = g_l * jax.lax.rsqrt(var_l + EPS)
        shift_l = be_l - mean_l * scale_l
        return y * scale_l + shift_l

    # conv1 -> bn1 -> swish
    pad_ref[:, 1:H + 1, :] = x
    y = conv3x3(w1_ref, b1_l)
    y = batchnorm(y, g1_l, be1_l)
    y = y * jax.nn.sigmoid(y)

    # conv2 -> bn2 -> residual add (borders of pad_ref are still zero)
    pad_ref[:, 1:H + 1, :] = y.reshape(N, H, L)
    z = conv3x3(w2_ref, b2_l)
    z = batchnorm(z, g2_l, be2_l)

    out_ref[...] = (z + x.reshape(N * H, L)).reshape(N, H, L).astype(out_ref.dtype)


def _fuse_conv_weight(w_oihw, width):
    """PyTorch (Cout, Cin, 3, 3) conv weight -> fused (3*W*Cin, W*Cout) matrix.

    Row index = dy*W*Cin + w_in*Cin + cin, column index = w_out*Cout + cout.
    W-boundary taps are omitted (they would multiply zero padding).
    """
    c_out, c_in, kh, kw = w_oihw.shape
    k_t = jnp.transpose(w_oihw.astype(jnp.float32), (2, 3, 1, 0))  # (kh, kw, Cin, Cout)
    dx = jnp.arange(kw).reshape(kw, 1, 1)
    w_in = jnp.arange(width).reshape(1, width, 1)
    w_out = jnp.arange(width).reshape(1, 1, width)
    shift = (w_in == w_out + dx - 1).astype(jnp.float32)           # (kw, W, W)
    fused = jnp.einsum("xio,yxab->yiaob", shift, k_t)              # (kh, W, Cin, W, Cout)
    return fused.reshape(kh * width * c_in, width * c_out)


def residual_block(x_nchw, params):
    """Apply the residual block. x_nchw: (N, C, H, W) float32, returns NCHW."""
    N, C, H, W = x_nchw.shape
    L = W * C

    # NCHW -> lane-dense fused (N, H, W*C) layout (glue only)
    x_f = jnp.transpose(x_nchw, (0, 2, 3, 1)).reshape(N, H, L).astype(jnp.float32)

    w1 = _fuse_conv_weight(params["w1"], W)                        # (3*L, L)
    w2 = _fuse_conv_weight(params["w2"], W)

    tile = lambda v: jnp.tile(v.astype(jnp.float32), W)            # (C,) -> (L,)
    p_pack = jnp.stack([tile(params["b1"]), tile(params["g1"]), tile(params["be1"]),
                        tile(params["b2"]), tile(params["g2"]), tile(params["be2"])],
                       axis=0)                                     # (6, L)

    kernel = functools.partial(_residual_block_kernel, n_ch=C, width=W)

    flops = 2 * 2 * (N * H) * (3 * L) * L                          # two fused conv matmuls
    bytes_accessed = 4 * (2 * N * H * L + 2 * 3 * L * L + 6 * L)

    out_f = pl.pallas_call(
        kernel,
        out_shape=jax.ShapeDtypeStruct((N, H, L), jnp.float32),
        grid=(1,),
        in_specs=[
            pl.BlockSpec((N, H, L), lambda i: (0, 0, 0)),
            pl.BlockSpec((3 * L, L), lambda i: (0, 0)),
            pl.BlockSpec((3 * L, L), lambda i: (0, 0)),
            pl.BlockSpec((6, L), lambda i: (0, 0)),
        ],
        out_specs=pl.BlockSpec((N, H, L), lambda i: (0, 0, 0)),
        scratch_shapes=[pltpu.VMEM((N, H + 2, L), jnp.float32)],
        compiler_params=pltpu.CompilerParams(
            dimension_semantics=("arbitrary",)),
        cost_estimate=pl.CostEstimate(flops=flops,
                                      transcendentals=N * H * L,
                                      bytes_accessed=bytes_accessed),
    )(x_f, w1, w2, p_pack)

    # fused (N, H, W*C) -> NCHW (glue only)
    return jnp.transpose(out_f.reshape(N, H, W, C), (0, 3, 1, 2))


def _reference_forward(x_nchw, params):
    """Pure-JAX NCHW reference matching the PyTorch module forward."""
    def conv(x, w, b):
        y = jax.lax.conv_general_dilated(
            x, w, window_strides=(1, 1), padding="SAME",
            dimension_numbers=("NCHW", "OIHW", "NCHW"))
        return y + b.reshape(1, -1, 1, 1)

    def bn(y, g, b):
        mean = jnp.mean(y, axis=(0, 2, 3), keepdims=True)
        var = jnp.mean((y - mean) ** 2, axis=(0, 2, 3), keepdims=True)
        return (y - mean) / jnp.sqrt(var + EPS) * g.reshape(1, -1, 1, 1) + b.reshape(1, -1, 1, 1)

    y = bn(conv(x_nchw, params["w1"], params["b1"]), params["g1"], params["be1"])
    y = y * jax.nn.sigmoid(y)
    z = bn(conv(y, params["w2"], params["b2"]), params["g2"], params["be2"])
    return z + x_nchw


if __name__ == "__main__":
    # Small shapes consistent with the module (in_channels == n is required for
    # the residual add): N=2, C=8, H=W=16 -> fused lane width W*C = 128.
    N, C, H, W = 2, 8, 16, 16
    key = jax.random.PRNGKey(0)
    ks = jax.random.split(key, 9)

    params = {
        "w1": 0.1 * jax.random.normal(ks[0], (C, C, K, K), jnp.float32),
        "b1": 0.1 * jax.random.normal(ks[1], (C,), jnp.float32),
        "g1": 1.0 + 0.1 * jax.random.normal(ks[2], (C,), jnp.float32),
        "be1": 0.1 * jax.random.normal(ks[3], (C,), jnp.float32),
        "w2": 0.1 * jax.random.normal(ks[4], (C, C, K, K), jnp.float32),
        "b2": 0.1 * jax.random.normal(ks[5], (C,), jnp.float32),
        "g2": 1.0 + 0.1 * jax.random.normal(ks[6], (C,), jnp.float32),
        "be2": 0.1 * jax.random.normal(ks[7], (C,), jnp.float32),
    }
    x = jax.random.normal(ks[8], (N, C, H, W), jnp.float32)

    out = jax.block_until_ready(residual_block(x, params))
    ref = jax.block_until_ready(_reference_forward(x, params))

    assert out.shape == (N, C, H, W)
    assert jnp.allclose(out, ref, atol=1e-4, rtol=1e-4), (
        f"max abs err {jnp.max(jnp.abs(out - ref))}")
    print("KERNEL_OK")
</pallas_src>

<mosaic_0001>
module attributes {stable_mosaic.version = 11 : i64} {
  func.func @_residual_block_kernel(%arg0: i32, %arg1: memref<2x16x128xf32, #tpu.memory_space<vmem>>, %arg2: memref<384x128xf32, #tpu.memory_space<vmem>>, %arg3: memref<384x128xf32, #tpu.memory_space<vmem>>, %arg4: memref<6x128xf32, #tpu.memory_space<vmem>>, %arg5: memref<2x16x128xf32, #tpu.memory_space<vmem>>, %arg6: memref<2x18x128xf32, #tpu.memory_space<vmem>>) attributes {dimension_semantics = [#tpu.dimension_semantics<arbitrary>], iteration_bounds = array<i64: 1>, scalar_prefetch = 0 : i64, scratch_operands = 1 : i64, tpu.core_type = #tpu.core_type<tc>, window_params = [{pipeline_mode = #tpu.pipeline_mode<synchronous>, transform_indices = @transform_0, window_bounds = array<i64: 2, 16, 128>}, {pipeline_mode = #tpu.pipeline_mode<synchronous>, transform_indices = @transform_1, window_bounds = array<i64: 384, 128>}, {pipeline_mode = #tpu.pipeline_mode<synchronous>, transform_indices = @transform_2, window_bounds = array<i64: 384, 128>}, {pipeline_mode = #tpu.pipeline_mode<synchronous>, transform_indices = @transform_3, window_bounds = array<i64: 6, 128>}, {pipeline_mode = #tpu.pipeline_mode<synchronous>, transform_indices = @transform_4, window_bounds = array<i64: 2, 16, 128>}]} {
    %0 = tpu.iota {dimensions = array<i32: 0>} : vector<128x8xi32>
    %1 = tpu.iota {dimensions = array<i32: 1>} : vector<128x8xi32>
    %c8_i32 = arith.constant 8 : i32
    %c0_i32 = arith.constant 0 : i32
    %2 = arith.cmpi eq, %c8_i32, %c0_i32 : i32
    %c1_i32 = arith.constant 1 : i32
    %3 = arith.select %2, %c1_i32, %c8_i32 : i32
    %4 = vector.broadcast %3 : i32 to vector<128x8xi32>
    %5 = arith.remsi %0, %4 : vector<128x8xi32>
    %c0_i32_0 = arith.constant 0 : i32
    %6 = vector.broadcast %c0_i32_0 : i32 to vector<128x8xi32>
    %7 = arith.cmpi ne, %5, %6 : vector<128x8xi32>
    %c0_i32_1 = arith.constant 0 : i32
    %8 = vector.broadcast %c0_i32_1 : i32 to vector<128x8xi32>
    %9 = arith.cmpi slt, %5, %8 : vector<128x8xi32>
    %c0_i32_2 = arith.constant 0 : i32
    %10 = arith.cmpi slt, %3, %c0_i32_2 : i32
    %11 = vector.broadcast %10 : i1 to vector<128x8xi1>
    %12 = vector.broadcast %11 : vector<128x8xi1> to vector<128x8xi1>
    %13 = arith.xori %9, %12 : vector<128x8xi1>
    %14 = arith.andi %13, %7 : vector<128x8xi1>
    %15 = vector.broadcast %3 : i32 to vector<128x8xi32>
    %16 = arith.addi %5, %15 : vector<128x8xi32>
    %17 = arith.select %14, %16, %5 : vector<128x8xi1>, vector<128x8xi32>
    %18 = arith.cmpi eq, %17, %1 : vector<128x8xi32>
    %19 = arith.extui %18 : vector<128x8xi1> to vector<128x8xi32>
    %20 = arith.sitofp %19 : vector<128x8xi32> to vector<128x8xf32>
    %21 = tpu.iota {dimensions = array<i32: 1>} : vector<8x128xi32>
    %22 = tpu.iota {dimensions = array<i32: 0>} : vector<8x128xi32>
    %c8_i32_3 = arith.constant 8 : i32
    %c0_i32_4 = arith.constant 0 : i32
    %23 = arith.cmpi eq, %c8_i32_3, %c0_i32_4 : i32
    %c1_i32_5 = arith.constant 1 : i32
    %24 = arith.select %23, %c1_i32_5, %c8_i32_3 : i32
    %25 = vector.broadcast %24 : i32 to vector<8x128xi32>
    %26 = arith.remsi %21, %25 : vector<8x128xi32>
    %c0_i32_6 = arith.constant 0 : i32
    %27 = vector.broadcast %c0_i32_6 : i32 to vector<8x128xi32>
    %28 = arith.cmpi ne, %26, %27 : vector<8x128xi32>
    %c0_i32_7 = arith.constant 0 : i32
    %29 = vector.broadcast %c0_i32_7 : i32 to vector<8x128xi32>
    %30 = arith.cmpi slt, %26, %29 : vector<8x128xi32>
    %c0_i32_8 = arith.constant 0 : i32
    %31 = arith.cmpi slt, %24, %c0_i32_8 : i32
    %32 = vector.broadcast %31 : i1 to vector<8x128xi1>
    %33 = vector.broadcast %32 : vector<8x128xi1> to vector<8x128xi1>
    %34 = arith.xori %30, %33 : vector<8x128xi1>
    %35 = arith.andi %34, %28 : vector<8x128xi1>
    %36 = vector.broadcast %24 : i32 to vector<8x128xi32>
    %37 = arith.addi %26, %36 : vector<8x128xi32>
    %38 = arith.select %35, %37, %26 : vector<8x128xi1>, vector<8x128xi32>
    %39 = arith.cmpi eq, %38, %22 : vector<8x128xi32>
    %40 = arith.extui %39 : vector<8x128xi1> to vector<8x128xi32>
    %41 = arith.sitofp %40 : vector<8x128xi32> to vector<8x128xf32>
    %c0 = arith.constant 0 : index
    %c0_9 = arith.constant 0 : index
    %42 = vector.load %arg4[%c0, %c0_9] : memref<6x128xf32, #tpu.memory_space<vmem>>, vector<6x128xf32>
    %43 = vector.extract_strided_slice %42 {offsets = [0, 0], sizes = [1, 128], strides = [1, 1]} : vector<6x128xf32> to vector<1x128xf32>
    %44 = vector.extract_strided_slice %42 {offsets = [1, 0], sizes = [1, 128], strides = [1, 1]} : vector<6x128xf32> to vector<1x128xf32>
    %45 = vector.extract_strided_slice %42 {offsets = [2, 0], sizes = [1, 128], strides = [1, 1]} : vector<6x128xf32> to vector<1x128xf32>
    %46 = vector.extract_strided_slice %42 {offsets = [3, 0], sizes = [1, 128], strides = [1, 1]} : vector<6x128xf32> to vector<1x128xf32>
    %47 = vector.extract_strided_slice %42 {offsets = [4, 0], sizes = [1, 128], strides = [1, 1]} : vector<6x128xf32> to vector<1x128xf32>
    %48 = vector.extract_strided_slice %42 {offsets = [5, 0], sizes = [1, 128], strides = [1, 1]} : vector<6x128xf32> to vector<1x128xf32>
    %cst = arith.constant 0.000000e+00 : f32
    %49 = vector.broadcast %cst : f32 to vector<2x18x128xf32>
    %c0_10 = arith.constant 0 : index
    %c0_11 = arith.constant 0 : index
    %c0_12 = arith.constant 0 : index
    %50 = vector.load %arg6[%c0_10, %c0_11, %c0_12] : memref<2x18x128xf32, #tpu.memory_space<vmem>>, vector<2x18x128xf32>
    tpu.vector_store %arg6[%c0_10, %c0_11, %c0_12], %49 {strides = array<i32>} : memref<2x18x128xf32, #tpu.memory_space<vmem>>, vector<2x18x128xf32>,
    %c0_13 = arith.constant 0 : index
    %c0_14 = arith.constant 0 : index
    %c0_15 = arith.constant 0 : index
    %51 = vector.load %arg1[%c0_13, %c0_14, %c0_15] : memref<2x16x128xf32, #tpu.memory_space<vmem>>, vector<2x16x128xf32>
    %c0_16 = arith.constant 0 : index
    %c1 = arith.constant 1 : index
    %c0_17 = arith.constant 0 : index
    %52 = vector.load %arg6[%c0_16, %c1, %c0_17] : memref<2x18x128xf32, #tpu.memory_space<vmem>>, vector<2x16x128xf32>
    tpu.vector_store %arg6[%c0_16, %c1, %c0_17], %51 {strides = array<i32>} : memref<2x18x128xf32, #tpu.memory_space<vmem>>, vector<2x16x128xf32>,
    %c0_18 = arith.constant 0 : index
    %c0_19 = arith.constant 0 : index
    %c0_20 = arith.constant 0 : index
    %53 = vector.load %arg6[%c0_18, %c0_19, %c0_20] : memref<2x18x128xf32, #tpu.memory_space<vmem>>, vector<2x18x128xf32>
    %54 = vector.extract_strided_slice %53 {offsets = [0, 0, 0], sizes = [2, 16, 128], strides = [1, 1, 1]} : vector<2x18x128xf32> to vector<2x16x128xf32>
    %55 = vector.extract_strided_slice %53 {offsets = [0, 1, 0], sizes = [2, 16, 128], strides = [1, 1, 1]} : vector<2x18x128xf32> to vector<2x16x128xf32>
    %56 = vector.extract_strided_slice %53 {offsets = [0, 2, 0], sizes = [2, 16, 128], strides = [1, 1, 1]} : vector<2x18x128xf32> to vector<2x16x128xf32>
    %57 = tpu.concatenate %54, %55, %56 in 2 : vector<2x16x128xf32>, vector<2x16x128xf32>, vector<2x16x128xf32> -> vector<2x16x384xf32>
    %58 = vector.shape_cast %57 : vector<2x16x384xf32> to vector<32x384xf32>
    %c0_21 = arith.constant 0 : index
    %c0_22 = arith.constant 0 : index
    %59 = vector.load %arg2[%c0_21, %c0_22] : memref<384x128xf32, #tpu.memory_space<vmem>>, vector<384x128xf32>
    %cst_23 = arith.constant dense<0.000000e+00> : vector<32x128xf32>
    %60 = tpu.matmul %58, %59, %cst_23 {dimension_numbers = #tpu.dot_dimension_numbers<[1], [0], [0], [1], [0, 0, 1, 1], [], []>} : vector<32x384xf32>, vector<384x128xf32>, vector<32x128xf32> -> vector<32x128xf32>
    %61 = vector.broadcast %43 : vector<1x128xf32> to vector<32x128xf32>
    %62 = arith.addf %60, %61 : vector<32x128xf32>
    %cst_24 = arith.constant dense<0.000000e+00> : vector<128xf32>
    %63 = vector.multi_reduction <add>, %62, %cst_24 [0] : vector<32x128xf32> to vector<128xf32>
    %64 = vector.shape_cast %63 : vector<128xf32> to vector<1x128xf32>
    %65 = arith.mulf %62, %62 : vector<32x128xf32>
    %cst_25 = arith.constant dense<0.000000e+00> : vector<128xf32>
    %66 = vector.multi_reduction <add>, %65, %cst_25 [0] : vector<32x128xf32> to vector<128xf32>
    %67 = vector.shape_cast %66 : vector<128xf32> to vector<1x128xf32>
    %cst_26 = arith.constant dense<0.000000e+00> : vector<1x8xf32>
    %68 = tpu.matmul %64, %20, %cst_26 {dimension_numbers = #tpu.dot_dimension_numbers<[1], [0], [0], [1], [0, 0, 1, 1], [], []>} : vector<1x128xf32>, vector<128x8xf32>, vector<1x8xf32> -> vector<1x8xf32>
    %cst_27 = arith.constant 0.001953125 : f32
    %69 = vector.broadcast %cst_27 : f32 to vector<1x8xf32>
    %70 = arith.mulf %68, %69 : vector<1x8xf32>
    %cst_28 = arith.constant dense<0.000000e+00> : vector<1x8xf32>
    %71 = tpu.matmul %67, %20, %cst_28 {dimension_numbers = #tpu.dot_dimension_numbers<[1], [0], [0], [1], [0, 0, 1, 1], [], []>} : vector<1x128xf32>, vector<128x8xf32>, vector<1x8xf32> -> vector<1x8xf32>
    %cst_29 = arith.constant 0.001953125 : f32
    %72 = vector.broadcast %cst_29 : f32 to vector<1x8xf32>
    %73 = arith.mulf %71, %72 : vector<1x8xf32>
    %74 = arith.mulf %70, %70 : vector<1x8xf32>
    %75 = arith.subf %73, %74 : vector<1x8xf32>
    %cst_30 = arith.constant dense<0.000000e+00> : vector<1x128xf32>
    %76 = tpu.matmul %70, %41, %cst_30 {dimension_numbers = #tpu.dot_dimension_numbers<[1], [0], [0], [1], [0, 0, 1, 1], [], []>} : vector<1x8xf32>, vector<8x128xf32>, vector<1x128xf32> -> vector<1x128xf32>
    %cst_31 = arith.constant dense<0.000000e+00> : vector<1x128xf32>
    %77 = tpu.matmul %75, %41, %cst_31 {dimension_numbers = #tpu.dot_dimension_numbers<[1], [0], [0], [1], [0, 0, 1, 1], [], []>} : vector<1x8xf32>, vector<8x128xf32>, vector<1x128xf32> -> vector<1x128xf32>
    %cst_32 = arith.constant 9.99999974E-6 : f32
    %78 = vector.broadcast %cst_32 : f32 to vector<1x128xf32>
    %79 = arith.addf %77, %78 : vector<1x128xf32>
    %80 = math.rsqrt %79 : vector<1x128xf32>
    %81 = arith.mulf %44, %80 : vector<1x128xf32>
    %82 = arith.mulf %76, %81 : vector<1x128xf32>
    %83 = arith.subf %45, %82 : vector<1x128xf32>
    %84 = vector.broadcast %81 : vector<1x128xf32> to vector<32x128xf32>
    %85 = arith.mulf %62, %84 : vector<32x128xf32>
    %86 = vector.broadcast %83 : vector<1x128xf32> to vector<32x128xf32>
    %87 = arith.addf %85, %86 : vector<32x128xf32>
    %88 = arith.negf %87 : vector<32x128xf32>
    %89 = math.exp %88 : vector<32x128xf32>
    %cst_33 = arith.constant 1.000000e+00 : f32
    %90 = vector.broadcast %cst_33 : f32 to vector<32x128xf32>
    %91 = arith.addf %90, %89 : vector<32x128xf32>
    %92 = arith.divf %90, %91 : vector<32x128xf32>
    %93 = arith.mulf %87, %92 : vector<32x128xf32>
    %94 = vector.shape_cast %93 : vector<32x128xf32> to vector<2x16x128xf32>
    %c0_34 = arith.constant 0 : index
    %c1_35 = arith.constant 1 : index
    %c0_36 = arith.constant 0 : index
    %95 = vector.load %arg6[%c0_34, %c1_35, %c0_36] : memref<2x18x128xf32, #tpu.memory_space<vmem>>, vector<2x16x128xf32>
    tpu.vector_store %arg6[%c0_34, %c1_35, %c0_36], %94 {strides = array<i32>} : memref<2x18x128xf32, #tpu.memory_space<vmem>>, vector<2x16x128xf32>,
    %c0_37 = arith.constant 0 : index
    %c0_38 = arith.constant 0 : index
    %c0_39 = arith.constant 0 : index
    %96 = vector.load %arg6[%c0_37, %c0_38, %c0_39] : memref<2x18x128xf32, #tpu.memory_space<vmem>>, vector<2x18x128xf32>
    %97 = vector.extract_strided_slice %96 {offsets = [0, 0, 0], sizes = [2, 16, 128], strides = [1, 1, 1]} : vector<2x18x128xf32> to vector<2x16x128xf32>
    %98 = vector.extract_strided_slice %96 {offsets = [0, 1, 0], sizes = [2, 16, 128], strides = [1, 1, 1]} : vector<2x18x128xf32> to vector<2x16x128xf32>
    %99 = vector.extract_strided_slice %96 {offsets = [0, 2, 0], sizes = [2, 16, 128], strides = [1, 1, 1]} : vector<2x18x128xf32> to vector<2x16x128xf32>
    %100 = tpu.concatenate %97, %98, %99 in 2 : vector<2x16x128xf32>, vector<2x16x128xf32>, vector<2x16x128xf32> -> vector<2x16x384xf32>
    %101 = vector.shape_cast %100 : vector<2x16x384xf32> to vector<32x384xf32>
    %c0_40 = arith.constant 0 : index
    %c0_41 = arith.constant 0 : index
    %102 = vector.load %arg3[%c0_40, %c0_41] : memref<384x128xf32, #tpu.memory_space<vmem>>, vector<384x128xf32>
    %cst_42 = arith.constant dense<0.000000e+00> : vector<32x128xf32>
    %103 = tpu.matmul %101, %102, %cst_42 {dimension_numbers = #tpu.dot_dimension_numbers<[1], [0], [0], [1], [0, 0, 1, 1], [], []>} : vector<32x384xf32>, vector<384x128xf32>, vector<32x128xf32> -> vector<32x128xf32>
    %104 = vector.broadcast %46 : vector<1x128xf32> to vector<32x128xf32>
    %105 = arith.addf %103, %104 : vector<32x128xf32>
    %cst_43 = arith.constant dense<0.000000e+00> : vector<128xf32>
    %106 = vector.multi_reduction <add>, %105, %cst_43 [0] : vector<32x128xf32> to vector<128xf32>
    %107 = vector.shape_cast %106 : vector<128xf32> to vector<1x128xf32>
    %108 = arith.mulf %105, %105 : vector<32x128xf32>
    %cst_44 = arith.constant dense<0.000000e+00> : vector<128xf32>
    %109 = vector.multi_reduction <add>, %108, %cst_44 [0] : vector<32x128xf32> to vector<128xf32>
    %110 = vector.shape_cast %109 : vector<128xf32> to vector<1x128xf32>
    %cst_45 = arith.constant dense<0.000000e+00> : vector<1x8xf32>
    %111 = tpu.matmul %107, %20, %cst_45 {dimension_numbers = #tpu.dot_dimension_numbers<[1], [0], [0], [1], [0, 0, 1, 1], [], []>} : vector<1x128xf32>, vector<128x8xf32>, vector<1x8xf32> -> vector<1x8xf32>
    %cst_46 = arith.constant 0.001953125 : f32
    %112 = vector.broadcast %cst_46 : f32 to vector<1x8xf32>
    %113 = arith.mulf %111, %112 : vector<1x8xf32>
    %cst_47 = arith.constant dense<0.000000e+00> : vector<1x8xf32>
    %114 = tpu.matmul %110, %20, %cst_47 {dimension_numbers = #tpu.dot_dimension_numbers<[1], [0], [0], [1], [0, 0, 1, 1], [], []>} : vector<1x128xf32>, vector<128x8xf32>, vector<1x8xf32> -> vector<1x8xf32>
    %cst_48 = arith.constant 0.001953125 : f32
    %115 = vector.broadcast %cst_48 : f32 to vector<1x8xf32>
    %116 = arith.mulf %114, %115 : vector<1x8xf32>
    %117 = arith.mulf %113, %113 : vector<1x8xf32>
    %118 = arith.subf %116, %117 : vector<1x8xf32>
    %cst_49 = arith.constant dense<0.000000e+00> : vector<1x128xf32>
    %119 = tpu.matmul %113, %41, %cst_49 {dimension_numbers = #tpu.dot_dimension_numbers<[1], [0], [0], [1], [0, 0, 1, 1], [], []>} : vector<1x8xf32>, vector<8x128xf32>, vector<1x128xf32> -> vector<1x128xf32>
    %cst_50 = arith.constant dense<0.000000e+00> : vector<1x128xf32>
    %120 = tpu.matmul %118, %41, %cst_50 {dimension_numbers = #tpu.dot_dimension_numbers<[1], [0], [0], [1], [0, 0, 1, 1], [], []>} : vector<1x8xf32>, vector<8x128xf32>, vector<1x128xf32> -> vector<1x128xf32>
    %cst_51 = arith.constant 9.99999974E-6 : f32
    %121 = vector.broadcast %cst_51 : f32 to vector<1x128xf32>
    %122 = arith.addf %120, %121 : vector<1x128xf32>
    %123 = math.rsqrt %122 : vector<1x128xf32>
    %124 = arith.mulf %47, %123 : vector<1x128xf32>
    %125 = arith.mulf %119, %124 : vector<1x128xf32>
    %126 = arith.subf %48, %125 : vector<1x128xf32>
    %127 = vector.broadcast %124 : vector<1x128xf32> to vector<32x128xf32>
    %128 = arith.mulf %105, %127 : vector<32x128xf32>
    %129 = vector.broadcast %126 : vector<1x128xf32> to vector<32x128xf32>
    %130 = arith.addf %128, %129 : vector<32x128xf32>
    %131 = vector.shape_cast %51 : vector<2x16x128xf32> to vector<32x128xf32>
    %132 = arith.addf %130, %131 : vector<32x128xf32>
    %133 = vector.shape_cast %132 : vector<32x128xf32> to vector<2x16x128xf32>
    %c0_52 = arith.constant 0 : index
    %c0_53 = arith.constant 0 : index
    %c0_54 = arith.constant 0 : index
    %134 = vector.load %arg5[%c0_52, %c0_53, %c0_54] : memref<2x16x128xf32, #tpu.memory_space<vmem>>, vector<2x16x128xf32>
    tpu.vector_store %arg5[%c0_52, %c0_53, %c0_54], %133 {strides = array<i32>} : memref<2x16x128xf32, #tpu.memory_space<vmem>>, vector<2x16x128xf32>,
    return
  }
  func.func @transform_0(%arg0: i32) -> (i32, i32, i32) {
    %c0_i32 = arith.constant 0 : i32
    %c0_i32_0 = arith.constant 0 : i32
    %c0_i32_1 = arith.constant 0 : i32
    %c0_i32_2 = arith.constant 0 : i32
    return %c0_i32, %c0_i32_0, %c0_i32_1 : i32, i32, i32
  }
  func.func @transform_1(%arg0: i32) -> (i32, i32) {
    %c0_i32 = arith.constant 0 : i32
    %c0_i32_0 = arith.constant 0 : i32
    %c0_i32_1 = arith.constant 0 : i32
    return %c0_i32, %c0_i32_0 : i32, i32
  }
  func.func @transform_2(%arg0: i32) -> (i32, i32) {
    %c0_i32 = arith.constant 0 : i32
    %c0_i32_0 = arith.constant 0 : i32
    %c0_i32_1 = arith.constant 0 : i32
    return %c0_i32, %c0_i32_0 : i32, i32
  }
  func.func @transform_3(%arg0: i32) -> (i32, i32) {
    %c0_i32 = arith.constant 0 : i32
    %c0_i32_0 = arith.constant 0 : i32
    %c0_i32_1 = arith.constant 0 : i32
    return %c0_i32, %c0_i32_0 : i32, i32
  }
  func.func @transform_4(%arg0: i32) -> (i32, i32, i32) {
    %c0_i32 = arith.constant 0 : i32
    %c0_i32_0 = arith.constant 0 : i32
    %c0_i32_1 = arith.constant 0 : i32
    %c0_i32_2 = arith.constant 0 : i32
    return %c0_i32, %c0_i32_0, %c0_i32_1 : i32, i32, i32
  }
}

</mosaic_0001>

<bundles_post_ra>
// kernel: tpu_custom_call.1
= control target key start
LH: loop header
LB: loop body
LE: loop exit
PB: predicated region body
PF: predicated region fallthrough
CT: control target
= control target key end

     0   :  { %9 = vsyncpa [#allocation4], 0  ;;  %s2929_s0 = inlined_call_operand.hbm [shape: f32[2,16,128], index: 0, kind: input, shape index: {}]   ;;  %s2930_s1 = inlined_call_operand.hbm [shape: f32[384,128], index: 1, kind: input, shape index: {}]   ;;  %s2931_s2 = inlined_call_operand.hbm [shape: f32[384,128], index: 2, kind: input, shape index: {}]   ;;  %s2932_s3 = inlined_call_operand.vmem [shape: f32[6,128], index: 3, kind: input, shape index: {}]   ;;  %s2933_s4 = inlined_call_operand.hbm [shape: f32[2,16,128], index: 4, kind: output, shape index: {}]  }
   0x1   :  { %10 = vsyncpa [#allocation7], 0 }
   0x2   :  { %11 = vsyncpa [#allocation5], 0  ;;  %s2497_s15 = smov [#allocation6]   ;;  %s2498_s17 = smov [#allocation3]  }
   0x3   :  { %s29_s16 = sshll.u32 %s2497_s15, 4  ;;  %s17_s18 = sshll.u32 %s2498_s17, 4  ;;  %s30_s16 = int_to_ptr.vmem [resolvable:$true] %s29_s16  ;;  %s2533_s18 = int_to_ptr.vmem [resolvable:$true] %s17_s18 }
   0x4   :  { %s2403_s21 = scalar_lea.hbm %s2930_s1, 6144 }
   0x5   :  { %p2404_p0 = scmp.ne.s32.totalorder %s2930_s1, %s2403_s21  ;;  %p2407_p1 = scmp.lt.u32.totalorder %s2403_s21, %s2930_s1 }
   0x7   :  { %p2409_p2 = pnand %p2407_p1, %p2404_p0 }
   0x9   :  { %2412 = shalt.err (!%p2409_p2)
}
   0xa   :  { %s2413_s26 = scalar_lea.vmem %s30_s16, 6144  ;;  %p2418_p4 = scmp.lt.s32.totalorder %s30_s16, %s30_s16 }
   0xb   :  { %p2414_p3 = scmp.ne.s32.totalorder %s30_s16, %s2413_s26  ;;  %p2419_p5 = scmp.lt.s32.totalorder %s2413_s26, %s2413_s26 }
   0xd   :  { %p2420_p6 = por %p2419_p5, %p2418_p4 }
   0xf   :  { %p2421_p7 = pnand %p2420_p6, %p2414_p3 }
  0x11   :  { %2424 = shalt.err (!%p2421_p7)
}
  0x12   :  { %s2499_s27 = smov 128   ;;  %s2500_s28 = smov 8  }
  0x13   :  { %35 = dma.hbm_to_vmem [thread:$0]  %s2930_s1, 6144, %s30_s16, [#allocation7], %s2499_s27, %s2499_s27, %s2500_s28  }
  0x14   :  { %s2425_s7 = scalar_lea.hbm %s2929_s0, 512 }
  0x15   :  { %p2426_p8 = scmp.ne.s32.totalorder %s2929_s0, %s2425_s7  ;;  %p2429_p9 = scmp.lt.u32.totalorder %s2425_s7, %s2929_s0 }
  0x17   :  { %p2431_p10 = pnand %p2429_p9, %p2426_p8 }
  0x19   :  { %2434 = shalt.err (!%p2431_p10)
}
  0x1a   :  { %s2435_s12 = scalar_lea.vmem %s2533_s18, 512  ;;  %p2440_p12 = scmp.lt.s32.totalorder %s2533_s18, %s2533_s18 }
  0x1b   :  { %p2436_p11 = scmp.ne.s32.totalorder %s2533_s18, %s2435_s12  ;;  %p2441_p13 = scmp.lt.s32.totalorder %s2435_s12, %s2435_s12 }
  0x1d   :  { %p2442_p0 = por %p2441_p13, %p2440_p12 }
  0x1f   :  { %p2443_p1 = pnand %p2442_p0, %p2436_p11 }
  0x21   :  { %2446 = shalt.err (!%p2443_p1)
}
  0x22   :  { %23 = dma.hbm_to_vmem [thread:$0]  %s2929_s0, 512, %s2533_s18, [#allocation4], %s2499_s27, %s2499_s27, %s2500_s28  }
  0x23   :  { %s2501_s14 = smov [#allocation8]   ;;  %s2447_s19 = scalar_lea.hbm %s2931_s2, 6144 }
  0x24   :  { %s41_s15 = sshll.u32 %s2501_s14, 4  ;;  %p2448_p2 = scmp.ne.s32.totalorder %s2931_s2, %s2447_s19  ;;  %s42_s15 = int_to_ptr.vmem [resolvable:$true] %s41_s15 }
  0x25   :  { %p2451_p3 = scmp.lt.u32.totalorder %s2447_s19, %s2931_s2 }
  0x27   :  { %p2453_p4 = pnand %p2451_p3, %p2448_p2 }
  0x29   :  { %2456 = shalt.err (!%p2453_p4)
}
  0x2a   :  { %s2457_s24 = scalar_lea.vmem %s42_s15, 6144  ;;  %p2462_p6 = scmp.lt.s32.totalorder %s42_s15, %s42_s15 }
  0x2b   :  { %p2458_p5 = scmp.ne.s32.totalorder %s42_s15, %s2457_s24  ;;  %p2463_p7 = scmp.lt.s32.totalorder %s2457_s24, %s2457_s24 }
  0x2d   :  { %p2464_p8 = por %p2463_p7, %p2462_p6 }
  0x2f   :  { %p2465_p9 = pnand %p2464_p8, %p2458_p5 }
  0x31   :  { %2468 = shalt.err (!%p2465_p9)
}
  0x32   :  { %47 = dma.hbm_to_vmem [thread:$0]  %s2931_s2, 6144, %s42_s15, [#allocation7], %s2499_s27, %s2499_s27, %s2500_s28  }
  0x33   :  { %2491 = dma.done.wait [#allocation4], 512  }
  0x34   :  { %2492 = vsyncadd [#allocation4], 4294966784 }
  0x35   :  { %2493 = dma.done.wait [#allocation7], 12288  }
  0x36   :  { %2494 = vsyncadd [#allocation7], 4294955008  ;;  %v2502_v0 = vmov 0.0   ;;  %v406_v1 = vld [vmem:[#allocation6 + $0x80] sm:$0xff]  ;;  %v407_v2 = vld [vmem:[#allocation6 + $0x88] sm:$0xff]  ;;  %vm360_vm0 = vcmask 1046528  }
  0x37   :  { %334 = vst [vmem:[#allocation2] sm:$0xff] %v2502_v0  ;;  %335 = vst [vmem:[#allocation2 + $0x8] sm:$0xff] %v2502_v0  ;;  %v390_v3 = vld [vmem:[#allocation6] sm:$0xff]  ;;  %v2148_v4 = vpack.c.bf16 %v407_v2, %v406_v1  ;;  %v391_v5 = vld [vmem:[#allocation6 + $0x8] sm:$0xff]  ;;  %vm375_vm1 = vcmask 1045504  }
  0x38   :  { %336 = vst [vmem:[#allocation2 + $0x10] sm:$0x3] %v2502_v0  ;;  %337 = vst [vmem:[#allocation2 + $0x18] sm:$0xff] %v2502_v0  ;;  %v408_v6 = vld [vmem:[#allocation6 + $0x90] sm:$0xff]  ;;  %v409_v7 = vld [vmem:[#allocation6 + $0x98] sm:$0xff]  ;;  %v2150_v8 = vpack.c.bf16 %v391_v5, %v390_v3 }
  0x39   :  { %338 = vst [vmem:[#allocation2 + $0x20] sm:$0xff] %v2502_v0  ;;  %339 = vst [vmem:[#allocation2 + $0x28] sm:$0x3] %v2502_v0  ;;  %v2152_v9 = vpack.c.bf16 %v409_v7, %v408_v6  ;;  %v422_v10 = vld [vmem:[#allocation6 + $0x100] sm:$0xff]  ;;  %v423_v11 = vld [vmem:[#allocation6 + $0x108] sm:$0xff]  ;;  %2149 = vmatprep.subr.bf16.mxu0 %v2148_v4 }
  0x3a   :  { %v392_v12 = vld [vmem:[#allocation6 + $0x10] sm:$0xff]  ;;  %v2180_v13 = vpack.c.bf16 %v423_v11, %v422_v10  ;;  %v393_v14 = vld [vmem:[#allocation6 + $0x18] sm:$0xff]  ;;  %v410_v15 = vld [vmem:[#allocation6 + $0xa0] sm:$0xff]  ;;  %2151 = vmatpush3.bf16.msra.mxu0 %v2150_v8 }
  0x3b   :  { %v411_v16 = vld [vmem:[#allocation6 + $0xa8] sm:$0xff]  ;;  %v2154_v17 = vpack.c.bf16 %v393_v14, %v392_v12  ;;  %v424_v18 = vld [vmem:[#allocation6 + $0x110] sm:$0xff]  ;;  %v425_v19 = vld [vmem:[#allocation6 + $0x118] sm:$0xff]  ;;  %2153 = vmatprep.subr.bf16.mxu0 %v2152_v9 }
  0x3c   :  { %2181 = vmatprep.subr.bf16.mxu1 %v2180_v13  ;;  %v2156_v20 = vpack.c.bf16 %v411_v16, %v410_v15  ;;  %v2184_v21 = vpack.c.bf16 %v425_v19, %v424_v18  ;;  %v394_v22 = vld [vmem:[#allocation6 + $0x20] sm:$0xff]  ;;  %v395_v23 = vld [vmem:[#allocation6 + $0x28] sm:$0xff]  ;;  %v412_v24 = vld [vmem:[#allocation6 + $0xb0] sm:$0xff] }
  0x3d   :  { %2183 = vmatpush3.bf16.msra.mxu1 %v2180_v13  ;;  %v413_v25 = vld [vmem:[#allocation6 + $0xb8] sm:$0xff]  ;;  %v426_v26 = vld [vmem:[#allocation6 + $0x120] sm:$0xff]  ;;  %v427_v27 = vld [vmem:[#allocation6 + $0x128] sm:$0xff]  ;;  %v2158_v29 = vpack.c.bf16 %v395_v23, %v394_v22 }
  0x3e   :  { %2185 = vmatprep.subr.bf16.mxu1 %v2184_v21  ;;  %v2188_v28 = vpack.c.bf16 %v427_v27, %v426_v26  ;;  %2155 = vmatpush3.bf16.msra.mxu0 %v2154_v17  ;;  %v428_v30 = vld [vmem:[#allocation6 + $0x130] sm:$0xff]  ;;  %v429_v31 = vld [vmem:[#allocation6 + $0x138] sm:$0xff]  ;;  %v2160_v32 = vpack.c.bf16 %v413_v25, %v412_v24  ;;  %v414_v35 = vld [vmem:[#allocation6 + $0xc0] sm:$0xff] }
  0x3f   :  { %2157 = vmatprep.subr.bf16.mxu0 %v2156_v20  ;;  %v396_v33 = vld [vmem:[#allocation6 + $0x30] sm:$0xff]  ;;  %v397_v34 = vld [vmem:[#allocation6 + $0x38] sm:$0xff]  ;;  %v415_v36 = vld [vmem:[#allocation6 + $0xc8] sm:$0xff]  ;;  %v2192_v37 = vpack.c.bf16 %v429_v31, %v428_v30 }
  0x40   :  { %v2162_v38 = vpack.c.bf16 %v397_v34, %v396_v33  ;;  %v430_v39 = vld [vmem:[#allocation6 + $0x140] sm:$0xff]  ;;  %v431_v40 = vld [vmem:[#allocation6 + $0x148] sm:$0xff]  ;;  %v2164_v41 = vpack.c.bf16 %v415_v36, %v414_v35  ;;  %v416_v44 = vld [vmem:[#allocation6 + $0xd0] sm:$0xff] }
  0x41   :  { %2187 = vmatpush3.bf16.msra.mxu1 %v2184_v21  ;;  %v398_v42 = vld [vmem:[#allocation6 + $0x40] sm:$0xff]  ;;  %v399_v43 = vld [vmem:[#allocation6 + $0x48] sm:$0xff]  ;;  %v417_v45 = vld [vmem:[#allocation6 + $0xd8] sm:$0xff]  ;;  %v2196_v46 = vpack.c.bf16 %v431_v40, %v430_v39  ;;  %v59_v40 = vlaneseq }
  0x42   :  { %2189 = vmatprep.subr.bf16.mxu1 %v2188_v28  ;;  %2159 = vmatpush3.bf16.msra.mxu0 %v2158_v29  ;;  %v2591_v47 = vld [vmem:[#allocation3] sm:$0xff]  ;;  %v2593_v48 = vld [vmem:[#allocation3 + $0x8] sm:$0xff]  ;;  %v2166_v49 = vpack.c.bf16 %v399_v43, %v398_v42  ;;  %v432_v50 = vld [vmem:[#allocation6 + $0x150] sm:$0xff]  ;;  %v2168_v53 = vpack.c.bf16 %v417_v45, %v416_v44 }
  0x43   :  { %2161 = vmatprep.subr.bf16.mxu0 %v2160_v32  ;;  %v433_v51 = vld [vmem:[#allocation6 + $0x158] sm:$0xff]  ;;  %344 = vst [vmem:[#allocation2 + $0x1] sm:$0xff] %v2591_v47  ;;  %345 = vst [vmem:[#allocation2 + $0x9] sm:$0xff] %v2593_v48  ;;  %v2597_v52 = vld [vmem:[#allocation3 + $0x10] sm:$0xff]  ;;  %v2614_v43 = vand.u32 127, %v59_v40 }
  0x44   :  { %v400_v54 = vld [vmem:[#allocation6 + $0x50] sm:$0xff]  ;;  %v401_v55 = vld [vmem:[#allocation6 + $0x58] sm:$0xff]  ;;  %346 = vst [vmem:[#allocation2 + $0x19] sm:$0xff] %v2597_v52  ;;  %v418_v57 = vld [vmem:[#allocation6 + $0xe0] sm:$0xff]  ;;  %v2200_v59 = vpack.c.bf16 %v433_v51, %v432_v50 }
  0x45   :  { %2191 = vmatpush3.bf16.msra.mxu1 %v2188_v28  ;;  %v2599_v56 = vld [vmem:[#allocation3 + $0x18] sm:$0xff]  ;;  %v419_v58 = vld [vmem:[#allocation6 + $0xe8] sm:$0xff]  ;;  %v2170_v60 = vpack.c.bf16 %v401_v55, %v400_v54  ;;  %v434_v61 = vld [vmem:[#allocation6 + $0x160] sm:$0xff] }
  0x46   :  { %2193 = vmatprep.subr.bf16.mxu1 %v2192_v37  ;;  %2163 = vmatpush3.bf16.msra.mxu0 %v2162_v38  ;;  %347 = vst [vmem:[#allocation2 + $0x21] sm:$0xff] %v2599_v56  ;;  %v435_v62 = vld [vmem:[#allocation6 + $0x168] sm:$0xff]  ;;  %v2172_v63 = vpack.c.bf16 %v419_v58, %v418_v57  ;;  %v402_v1 = vld [vmem:[#allocation6 + $0x60] sm:$0xff]  ;;  %v420_v3 = vld [vmem:[#allocation6 + $0xf0] sm:$0xff] }
  0x47   :  { %2165 = vmatprep.subr.bf16.mxu0 %v2164_v41  ;;  %v403_v2 = vld [vmem:[#allocation6 + $0x68] sm:$0xff]  ;;  %v421_v4 = vld [vmem:[#allocation6 + $0xf8] sm:$0xff]  ;;  %v2204_v5 = vpack.c.bf16 %v435_v62, %v434_v61  ;;  %v436_v11 = vld [vmem:[#allocation6 + $0x170] sm:$0xff]  ;;  %v2611_v41 = vshrl.u32 %v59_v40, 7 }
  0x48   :  { %v2174_v8 = vpack.c.bf16 %v403_v2, %v402_v1  ;;  %v437_v12 = vld [vmem:[#allocation6 + $0x178] sm:$0xff]  ;;  %v2176_v14 = vpack.c.bf16 %v421_v4, %v420_v3  ;;  %v404_v15 = vld [vmem:[#allocation6 + $0x70] sm:$0xff] }
  0x49   :  { %2195 = vmatpush3.bf16.msra.mxu1 %v2192_v37  ;;  %v405_v16 = vld [vmem:[#allocation6 + $0x78] sm:$0xff]  ;;  %v2208_v20 = vpack.c.bf16 %v437_v12, %v436_v11  ;;  %v61_v42 = vadd.s32 8, %v2611_v41  ;;  %v82_v44 = vand.u32 7, %v2611_v41  ;;  %v63_v51 = vadd.s32 24, %v2611_v41 }
  0x4a   :  { %2197 = vmatprep.subr.bf16.mxu1 %v2196_v46  ;;  %2167 = vmatpush3.bf16.msra.mxu0 %v2166_v49  ;;  %v348_v6 = vld [vmem:[#allocation2] sm:$0xff]  ;;  %v349_v7 = vld [vmem:[#allocation2 + $0x8] sm:$0xff]  ;;  %v350_v19 = vld [vmem:[#allocation2 + $0x10] sm:$0x3]  ;;  %v2178_v22 = vpack.c.bf16 %v405_v16, %v404_v15  ;;  %v2503_v49 = vmov 0.0|0.0   ;;  %v64_v57 = vadd.s32 32, %v2611_v41 }
  0x4b   :  { %2169 = vmatprep.subr.bf16.mxu0 %v2168_v53  ;;  %v361_v9 = vrot.slane %v348_v6, 1  ;;  %v362_v10 = vrot.slane %v349_v7, 1  ;;  %v376_v13 = vrot.slane %v348_v6, 2  ;;  %v377_v17 = vrot.slane %v349_v7, 2  ;;  %v351_v25 = vld [vmem:[#allocation2 + $0x18] sm:$0xff] }
  0x4c   :  { %v364_v23 = vrot.slane %v350_v19, 1  ;;  %v379_v24 = vrot.slane %v350_v19, 2  ;;  %v381_v28 = vrot.slane %v351_v25, 2  ;;  %v366_v31 = vrot.slane %v351_v25, 1 }
  0x4d   :  { %2199 = vmatpush3.bf16.msra.mxu1 %v2196_v46  ;;  %v363_v18 = vsel %vm360_vm0, %v361_v9, %v362_v10  ;;  %v378_v21 = vsel %vm375_vm1, %v376_v13, %v377_v17  ;;  %v352_v26 = vld [vmem:[#allocation2 + $0x20] sm:$0xff]  ;;  %v353_v27 = vld [vmem:[#allocation2 + $0x28] sm:$0x3]  ;;  %v89_v45 = vand.u32 7, %v61_v42  ;;  %vm270_vm2 = vcmp.eq.s32.totalorder %v82_v44, %v2614_v43 }
  0x4e   :  { %2201 = vmatprep.subr.bf16.mxu1 %v2200_v59  ;;  %2171 = vmatpush3.bf16.msra.mxu0 %v2170_v60  ;;  %v382_v29 = vrot.slane %v352_v26, 2  ;;  %v365_v30 = vsel %vm360_vm0, %v362_v10, %v364_v23  ;;  %v367_v32 = vrot.slane %v352_v26, 1  ;;  %v380_v33 = vsel %vm375_vm1, %v377_v17, %v379_v24 }
  0x4f   :  { %2173 = vmatprep.subr.bf16.mxu0 %v2172_v63  ;;  %506 = vmatprep.mubr.f32.mxu0 %v363_v18  ;;  %v384_v34 = vrot.slane %v353_v27, 2  ;;  %v369_v37 = vrot.slane %v353_v27, 1  ;;  %vm271_vm3 = vcmp.eq.s32.totalorder %v89_v45, %v2614_v43  ;;  %v62_v46 = vadd.s32 16, %v2611_v41 }
  0x50   :  { %1944 = vmatprep.mubr.f32.mxu1 %v378_v21  ;;  %v383_v35 = vsel %vm375_vm1, %v381_v28, %v382_v29  ;;  %v368_v36 = vsel %vm360_vm0, %v366_v31, %v367_v32  ;;  %vm2621_vm4 = vmpackc.low %vm271_vm3, %vm270_vm2  ;;  %v2504_v53 = vmov 1.0|1.0   ;;  %v103_v55 = vand.u32 7, %v63_v51 }
  0x51   :  { %2203 = vmatpush3.bf16.msra.mxu1 %v2200_v59  ;;  %v385_v38 = vsel %vm375_vm1, %v382_v29, %v384_v34  ;;  %v370_v39 = vsel %vm360_vm0, %v367_v32, %v369_v37  ;;  %v96_v54 = vand.u32 7, %v62_v46  ;;  %v65_v58 = vadd.s32 40, %v2611_v41 }
  0x52   :  { %2205 = vmatprep.subr.bf16.mxu1 %v2204_v5  ;;  %2175 = vmatpush3.bf16.msra.mxu0 %v2174_v8  ;;  %vm273_vm6 = vcmp.eq.s32.totalorder %v103_v55, %v2614_v43  ;;  %v110_v60 = vand.u32 7, %v64_v57  ;;  %v66_v62 = vadd.s32 48, %v2611_v41  ;;  %v67_v63 = vadd.s32 56, %v2611_v41 }
  0x53   :  { %2177 = vmatprep.subr.bf16.mxu0 %v2176_v14  ;;  %vm272_vm5 = vcmp.eq.s32.totalorder %v96_v54, %v2614_v43  ;;  %v117_v61 = vand.u32 7, %v65_v58  ;;  %v68_v4 = vadd.s32 64, %v2611_v41  ;;  %v70_v9 = vadd.s32 80, %v2611_v41 }
  0x54   :  { %vm2639_vm7 = vmpackc.low %vm273_vm6, %vm272_vm5  ;;  %vm274_vm8 = vcmp.eq.s32.totalorder %v110_v60, %v2614_v43  ;;  %v124_v2 = vand.u32 7, %v66_v62  ;;  %v131_v3 = vand.u32 7, %v67_v63  ;;  %v71_v10 = vadd.s32 88, %v2611_v41 }
  0x55   :  { %2207 = vmatpush3.bf16.msra.mxu1 %v2204_v5  ;;  %vm275_vm9 = vcmp.eq.s32.totalorder %v117_v61, %v2614_v43  ;;  %v69_v5 = vadd.s32 72, %v2611_v41  ;;  %v152_v12 = vand.u32 7, %v70_v9  ;;  %v72_v14 = vadd.s32 96, %v2611_v41 }
  0x56   :  { %2209 = vmatprep.subr.bf16.mxu1 %v2208_v20  ;;  %2179 = vmatpush3.bf16.msra.mxu0 %v2178_v22  ;;  %vm2655_vm10 = vmpackc.low %vm275_vm9, %vm274_vm8  ;;  %vm276_vm11 = vcmp.eq.s32.totalorder %v124_v2, %v2614_v43  ;;  %vm277_vm12 = vcmp.eq.s32.totalorder %v131_v3, %v2614_v43  ;;  %v159_v13 = vand.u32 7, %v71_v10  ;;  %v73_v15 = vadd.s32 104, %v2611_v41 }
  0x57   :  { %2212 = vmatprep.subr.bf16.mxu0 %v2503_v49  ;;  %vm2671_vm13 = vmpackc.low %vm277_vm12, %vm276_vm11  ;;  %v145_v8 = vand.u32 7, %v69_v5  ;;  %vm280_vm3 = vcmp.eq.s32.totalorder %v152_v12, %v2614_v43  ;;  %v166_v17 = vand.u32 7, %v72_v14  ;;  %v74_v19 = vadd.s32 112, %v2611_v41 }
  0x58   :  { %vm281_vm5 = vcmp.eq.s32.totalorder %v159_v13, %v2614_v43  ;;  %v173_v18 = vand.u32 7, %v73_v15  ;;  %v1076_v59 = vsub.s32 3, %v2611_v41 }
  0x59   :  { %2211 = vmatpush3.bf16.msra.mxu1 %v2208_v20  ;;  %507 = vmatmul.mubr.f32.vlgmr.msra.gmra.mrb[0].mxu0 %v348_v6  ;;  %vm279_vm15 = vcmp.eq.s32.totalorder %v145_v8, %v2614_v43  ;;  %vm2703_vm6 = vmpackc.low %vm281_vm5, %vm280_vm3  ;;  %vm282_vm8 = vcmp.eq.s32.totalorder %v166_v17, %v2614_v43  ;;  %v75_v20 = vadd.s32 120, %v2611_v41  ;;  %v180_v22 = vand.u32 7, %v74_v19 }
  0x5a   :  { %511 = vmatprep.mubr.f32.mxu0 %v365_v30  ;;  %2236 = vmatprep.subr.bf16.mxu1 %v2503_v49  ;;  %vm283_vm9 = vcmp.eq.s32.totalorder %v173_v18, %v2614_v43  ;;  %vm2505_vm3 = vmmov 0  }
  0x5b   :  { %2214 = vmatpush3.bf16.msk.msra.mxu0 %vm2621_vm4, %v2504_v53  ;;  %vm2719_vm11 = vmpackc.low %vm283_vm9, %vm282_vm8  ;;  %v187_v23 = vand.u32 7, %v75_v20  ;;  %vm284_vm12 = vcmp.eq.s32.totalorder %v180_v22, %v2614_v43  ;;  %vm778_vm8 = vcmask 64512  }
  0x5c   :  { %1945 = vmatmul.mubr.f32.vlgmr.msra.gmra.mrb[0].mxu1 %v380_v33  ;;  %2215 = vmatprep.subr.bf16.mxu0 %v2503_v49 }
  0x5d   :  { %1947 = vmatprep.mubr.f32.mxu1 %v383_v35  ;;  %512 = vmatmul.mubr.f32.gmra.mrb[2].mxu0 %v349_v7  ;;  %v138_v7 = vand.u32 7, %v68_v4 }
  0x5e   :  { %516 = vmatprep.mubr.f32.mxu0 %v368_v36  ;;  %2238 = vmatpush3.bf16.msk.msra.mxu1 %vm2621_vm4, %v2504_v53 }
  0x5f   :  { %2239 = vmatprep.subr.bf16.mxu1 %v2503_v49  ;;  %2217 = vmatpush3.bf16.msk.msra.mxu0 %vm2639_vm7, %v2504_v53  ;;  %vm278_vm14 = vcmp.eq.s32.totalorder %v138_v7, %v2614_v43 }
  0x60   :  { %1948 = vmatmul.mubr.f32.gmra.mrb[2].mxu1 %v385_v38  ;;  %2218 = vmatprep.subr.bf16.mxu0 %v2503_v49  ;;  %vm2687_vm2 = vmpackc.low %vm279_vm15, %vm278_vm14  ;;  %vm285_vm14 = vcmp.eq.s32.totalorder %v187_v23, %v2614_v43 }
  0x61   :  { %517 = vmatmul.mubr.f32.gmra.mrb[4].mxu0 %v351_v25  ;;  %vm2733_vm15 = vmpackc.low %vm285_vm14, %vm284_vm12  ;;  %2017 = vmatprep.mubr.msk.f32.mxu1 %vm2505_vm3, %v2502_v0  ;;  %v440_v25 = vsub.s32 0, %v2611_v41 }
  0x62   :  { %521 = vmatprep.mubr.f32.mxu0 %v370_v39  ;;  %2241 = vmatpush3.bf16.msk.msra.mxu1 %vm2639_vm7, %v2504_v53 }
  0x63   :  { %2242 = vmatprep.subr.bf16.mxu1 %v2503_v49  ;;  %2220 = vmatpush3.bf16.msk.msra.mxu0 %vm2655_vm10, %v2504_v53 }
  0x64   :  { %2221 = vmatprep.subr.bf16.mxu0 %v2503_v49 }
  0x65   :  { %522 = vmatmul.mubr.f32.gmra.mrb[6].mxu0 %v352_v26  ;;  %v2753_v26 = vld [vmem:[%s2932_s3] sm:$0x3f]  ;;  %s2507_s3 = smov [#allocation9]  }
  0x66   :  { %2244 = vmatpush3.bf16.msk.msra.mxu1 %vm2655_vm10, %v2504_v53  ;;  %1982 = vmatprep.mubr.msk.f32.mxu0 %vm2505_vm3, %v2502_v0  ;;  %v441_v28 = vrot.slane %v2753_v26, %v440_v25  ;;  %v1077_v11 = vrot.slane %v2753_v26, %v1076_v59  ;;  %s1602_s26 = sshll.u32 %s2507_s3, 4  ;;  %s1603_s26 = int_to_ptr.vmem [resolvable:$true] %s1602_s26 }
  0x67   :  { %2245 = vmatprep.subr.bf16.mxu1 %v2503_v49  ;;  %2223 = vmatpush3.bf16.msk.msra.mxu0 %vm2671_vm13, %v2504_v53  ;;  %s2469_s29 = scalar_lea.vmem %s1603_s26, 512  ;;  %p2474_p11 = scmp.lt.s32.totalorder %s1603_s26, %s1603_s26 }
  0x68   :  { %2224 = vmatprep.subr.bf16.mxu0 %v2503_v49  ;;  %p2470_p10 = scmp.ne.s32.totalorder %s1603_s26, %s2469_s29  ;;  %p2475_p12 = scmp.lt.s32.totalorder %s2469_s29, %s2469_s29 }
  0x6a   :  { %2247 = vmatpush3.bf16.msk.msra.mxu1 %vm2671_vm13, %v2504_v53  ;;  %p2476_p13 = por %p2475_p12, %p2474_p11 }
  0x6b   :  { %2248 = vmatprep.subr.bf16.mxu1 %v2503_v49  ;;  %2226 = vmatpush3.bf16.msk.msra.mxu0 %vm2687_vm2, %v2504_v53 }
  0x6c   :  { %2227 = vmatprep.subr.bf16.mxu0 %v2503_v49  ;;  %p2477_p0 = pnand %p2476_p13, %p2470_p10 }
  0x6e   :  { %2250 = vmatpush3.bf16.msk.msra.mxu1 %vm2687_vm2, %v2504_v53 }
  0x6f   :  { %2251 = vmatprep.subr.bf16.mxu1 %v2503_v49  ;;  %2229 = vmatpush3.bf16.msk.msra.mxu0 %vm2703_vm6, %v2504_v53 }
  0x70   :  { %2230 = vmatprep.subr.bf16.mxu0 %v2503_v49 }
  0x72   :  { %2253 = vmatpush3.bf16.msk.msra.mxu1 %vm2703_vm6, %v2504_v53 }
  0x73   :  { %2254 = vmatprep.subr.bf16.mxu1 %v2503_v49  ;;  %2232 = vmatpush3.bf16.msk.msra.mxu0 %vm2719_vm11, %v2504_v53 }
  0x74   :  { %2233 = vmatprep.subr.bf16.mxu0 %v2503_v49 }
  0x76   :  { %2256 = vmatpush3.bf16.msk.msra.mxu1 %vm2719_vm11, %v2504_v53 }
  0x77   :  { %2257 = vmatprep.subr.bf16.mxu1 %v2503_v49  ;;  %2235 = vmatpush3.bf16.msk.msra.mxu0 %vm2733_vm15, %v2504_v53 }
  0x78   :  { %2020 = vmatprep.subr.mxu0 %v2502_v0 }
  0x7a   :  { %2259 = vmatpush3.bf16.msk.msra.mxu1 %vm2733_vm15, %v2504_v53 }
  0x7b   :  { %2025 = vmatprep.subr.mxu1 %v2502_v0 }
 0x12c   :  { %v1740_v27 = vpop.f32.mrb[0].mxu0 }
 0x12d   :  { %v1741_v29 = vpop.f32.mrb[1].mxu0 }
 0x12e   :  { %v1742_v30 = vadd.f32 %v1741_v29, %v1740_v27 }
 0x12f   :  { %v1946_v31 = vpop.f32.mrb[0].mxu1 }
 0x130   :  { %v593_v32 = vpop.f32.mrb[1].mxu1  ;;  %v1743_v33 = vpop.f32.mrb[2].mxu0  ;;  %v509_v34 = vadd.f32 %v1742_v30, %v441_v28  ;;  %v2506_v30 = vmov 1.0  }
 0x131   :  { %v1744_v35 = vpop.f32.mrb[3].mxu0 }
 0x132   :  { %v1745_v36 = vadd.f32 %v1744_v35, %v1743_v33  ;;  %v2756_v37 = vadd.f32 %v593_v32, %v509_v34 }
 0x133   :  { %v1949_v38 = vpop.f32.mrb[2].mxu1 }
 0x134   :  { %v603_v39 = vpop.f32.mrb[3].mxu1  ;;  %v514_v40 = vadd.f32 %v1745_v36, %v441_v28  ;;  %v1746_v42 = vpop.f32.mrb[4].mxu0  ;;  %v621_v62 = vmul.f32 %v2756_v37, %v2756_v37 }
 0x135   :  { %v1747_v44 = vpop.f32.mrb[5].mxu0 }
 0x136   :  { %v2758_v45 = vadd.f32 %v1946_v31, %v514_v40  ;;  %v1748_v46 = vadd.f32 %v1747_v44, %v1746_v42  ;;  %v1043_v40 = vld [vmem:[#allocation8 + $0x88] sm:$0xff]  ;;  %v1058_v42 = vld [vmem:[#allocation8 + $0x100] sm:$0xff] }
 0x138   :  { %v1749_v51 = vpop.f32.mrb[6].mxu0  ;;  %v519_v54 = vadd.f32 %v1748_v46, %v441_v28  ;;  %v622_v57 = vmul.f32 %v2758_v45, %v2758_v45  ;;  %v612_v61 = vadd.f32 %v2758_v45, %v2756_v37  ;;  %v1059_v46 = vld [vmem:[#allocation8 + $0x108] sm:$0xff] }
 0x139   :  { %v1750_v55 = vpop.f32.mrb[7].mxu0 }
 0x13a   :  { %v1751_v58 = vadd.f32 %v1750_v55, %v1749_v51  ;;  %v2762_v60 = vadd.f32 %v603_v39, %v519_v54  ;;  %v625_v3 = vadd.f32 %v622_v57, %v621_v62  ;;  %v1042_v39 = vld [vmem:[#allocation8 + $0x80] sm:$0xff]  ;;  %v1027_v54 = vld [vmem:[#allocation8 + $0x8] sm:$0xff]  ;;  %v2292_v55 = vpack.c.bf16 %v1059_v46, %v1058_v42  ;;  %v1060_v62 = vld [vmem:[#allocation8 + $0x110] sm:$0xff] }
 0x13b   :  { %v2260_v44 = vpack.c.bf16 %v1043_v40, %v1042_v39  ;;  %v1026_v51 = vld [vmem:[#allocation8] sm:$0xff]  ;;  %v1035_v40 = vld [vmem:[#allocation8 + $0x48] sm:$0xff]  ;;  %v1052_v46 = vld [vmem:[#allocation8 + $0xd0] sm:$0xff] }
 0x13c   :  { %v524_v63 = vadd.f32 %v1751_v58, %v441_v28  ;;  %v623_v2 = vmul.f32 %v2762_v60, %v2762_v60  ;;  %v613_v5 = vadd.f32 %v612_v61, %v2762_v60  ;;  %v322_v28 = vand.u32 7, %v2614_v43  ;;  %v1044_v58 = vld [vmem:[#allocation8 + $0x90] sm:$0xff]  ;;  %v1045_v61 = vld [vmem:[#allocation8 + $0x98] sm:$0xff]  ;;  %v1034_v39 = vld [vmem:[#allocation8 + $0x40] sm:$0xff] }
 0x13d   :  { %v2262_v57 = vpack.c.bf16 %v1027_v54, %v1026_v51  ;;  %v1053_v51 = vld [vmem:[#allocation8 + $0xd8] sm:$0xff]  ;;  %v1068_v54 = vld [vmem:[#allocation8 + $0x150] sm:$0xff] }
 0x13e   :  { %v2770_v4 = vadd.f32 %v1949_v38, %v524_v63  ;;  %v626_v9 = vadd.f32 %v625_v3, %v623_v2  ;;  %vm2782_vm5 = vcmp.eq.s32.totalorder %v322_v28, %v2611_v41  ;;  %v2264_v63 = vpack.c.bf16 %v1045_v61, %v1044_v58  ;;  %v1061_v2 = vld [vmem:[#allocation8 + $0x118] sm:$0xff]  ;;  %v1028_v3 = vld [vmem:[#allocation8 + $0x10] sm:$0xff] }
 0x13f   :  { %v1032_v28 = vld [vmem:[#allocation8 + $0x30] sm:$0xff]  ;;  %v1037_v61 = vld [vmem:[#allocation8 + $0x58] sm:$0xff] }
 0x140   :  { %v624_v7 = vmul.f32 %v2770_v4, %v2770_v4  ;;  %v614_v8 = vadd.f32 %v613_v5, %v2770_v4  ;;  %v1029_v5 = vld [vmem:[#allocation8 + $0x18] sm:$0xff]  ;;  %v1036_v58 = vld [vmem:[#allocation8 + $0x50] sm:$0xff] }
 0x142   :  { %v615_v10 = vrot.slane %v614_v8, 4  ;;  %v627_v12 = vadd.f32 %v626_v9, %v624_v7  ;;  %v2296_v7 = vpack.c.bf16 %v1061_v2, %v1060_v62  ;;  %v1046_v9 = vld [vmem:[#allocation8 + $0xa0] sm:$0xff] }
 0x143   :  { %v1054_v2 = vld [vmem:[#allocation8 + $0xe0] sm:$0xff] }
 0x144   :  { %v616_v13 = vadd.f32 %v615_v10, %v614_v8  ;;  %v628_v14 = vrot.slane %v627_v12, 4  ;;  %v2266_v8 = vpack.c.bf16 %v1029_v5, %v1028_v3  ;;  %v1047_v10 = vld [vmem:[#allocation8 + $0xa8] sm:$0xff]  ;;  %v1070_v5 = vld [vmem:[#allocation8 + $0x160] sm:$0xff] }
 0x145   :  { %v1055_v3 = vld [vmem:[#allocation8 + $0xe8] sm:$0xff] }
 0x146   :  { %v617_v15 = vrot.slane %v616_v13, 2  ;;  %v629_v17 = vadd.f32 %v628_v14, %v627_v12  ;;  %v1062_v12 = vld [vmem:[#allocation8 + $0x120] sm:$0xff]  ;;  %v1063_v14 = vld [vmem:[#allocation8 + $0x128] sm:$0xff] }
 0x148   :  { %v618_v18 = vadd.f32 %v617_v15, %v616_v13  ;;  %v630_v19 = vrot.slane %v629_v17, 2  ;;  %v2268_v13 = vpack.c.bf16 %v1047_v10, %v1046_v9  ;;  %v1030_v15 = vld [vmem:[#allocation8 + $0x20] sm:$0xff]  ;;  %v1039_v10 = vld [vmem:[#allocation8 + $0x68] sm:$0xff] }
 0x149   :  { %v1038_v9 = vld [vmem:[#allocation8 + $0x60] sm:$0xff] }
 0x14a   :  { %v619_v20 = vrot.slane %v618_v18, 1  ;;  %v631_v22 = vadd.f32 %v630_v19, %v629_v17  ;;  %v1031_v17 = vld [vmem:[#allocation8 + $0x28] sm:$0xff] }
 0x14b   :  { %v2270_v19 = vpack.c.bf16 %v1031_v17, %v1030_v15  ;;  %v1057_v15 = vld [vmem:[#allocation8 + $0xf8] sm:$0xff]  ;;  %v1072_v17 = vld [vmem:[#allocation8 + $0x170] sm:$0xff] }
 0x14c   :  { %v620_v23 = vadd.f32 %v619_v20, %v618_v18  ;;  %v632_v25 = vrot.slane %v631_v22, 1  ;;  %v2300_v18 = vpack.c.bf16 %v1063_v14, %v1062_v12  ;;  %v1048_v20 = vld [vmem:[#allocation8 + $0xb0] sm:$0xff] }
 0x14d   :  { %v1056_v14 = vld [vmem:[#allocation8 + $0xf0] sm:$0xff] }
 0x14e   :  { %1983 = vmatmul.mubr.f32.vlgmr.msra.gmra.mrb[8].mxu0 %v620_v23  ;;  %v633_v27 = vadd.f32 %v632_v25, %v631_v22  ;;  %v1049_v22 = vld [vmem:[#allocation8 + $0xb8] sm:$0xff]  ;;  %v1064_v23 = vld [vmem:[#allocation8 + $0x130] sm:$0xff] }
 0x14f   :  { %2022 = vmatprep.mubr.msk.f32.mxu0 %vm2505_vm3, %v2502_v0  ;;  %2021 = vmatpush3.msk.msra.mxu0 %vm2782_vm5, %v2506_v30  ;;  %v2272_v25 = vpack.c.bf16 %v1049_v22, %v1048_v20  ;;  %v1040_v20 = vld [vmem:[#allocation8 + $0x70] sm:$0xff]  ;;  %v1041_v22 = vld [vmem:[#allocation8 + $0x78] sm:$0xff] }
 0x150   :  { %2018 = vmatmul.mubr.f32.vlgmr.msra.gmra.mrb[4].mxu1 %v633_v27  ;;  %2261 = vmatprep.subr.bf16.mxu0 %v2260_v44  ;;  %v1065_v27 = vld [vmem:[#allocation8 + $0x138] sm:$0xff]  ;;  %v2278_v44 = vpack.c.bf16 %v1035_v40, %v1034_v39 }
 0x151   :  { %2027 = vmatprep.mubr.msk.f32.mxu1 %vm2505_vm3, %v2502_v0  ;;  %2026 = vmatpush3.msk.msra.mxu1 %vm2782_vm5, %v2506_v30 }
 0x152   :  { %2293 = vmatprep.subr.bf16.mxu1 %v2292_v55 }
 0x221   :  { %v700_v31 = vpop.f32.mrb[8].mxu0 }
 0x222   :  { %v704_v32 = vmul.f32 0.001953125, %v700_v31  ;;  %v1984_v33 = vpop.f32.mrb[9].mxu0  ;;  %v1033_v31 = vld [vmem:[#allocation8 + $0x38] sm:$0xff] }
 0x223   :  { %v771_v34 = vpop.f32.mrb[4].mxu1  ;;  %v2274_v33 = vpack.c.bf16 %v1033_v31, %v1032_v28 }
 0x224   :  { %v776_v43 = vmul.f32 %v704_v32, %v704_v32  ;;  %v775_v35 = vmul.f32 0.001953125, %v771_v34  ;;  %v2019_v36 = vpop.f32.mrb[5].mxu1  ;;  %2023 = vmatmul.mubr.msk.f32.vlgmr.msra.gmra.mrb[10].mxu0 %vm778_vm8, %v704_v32  ;;  %v2304_v32 = vpack.c.bf16 %v1065_v27, %v1064_v23  ;;  %v1050_v34 = vld [vmem:[#allocation8 + $0xc0] sm:$0xff] }
 0x225   :  { %2263 = vmatpush3.bf16.msra.mxu0 %v2262_v57  ;;  %v1069_v57 = vld [vmem:[#allocation8 + $0x158] sm:$0xff] }
 0x226   :  { %v777_v38 = vsub.f32 %v775_v35, %v776_v43  ;;  %2265 = vmatprep.subr.bf16.mxu0 %v2264_v63  ;;  %v1051_v43 = vld [vmem:[#allocation8 + $0xc8] sm:$0xff]  ;;  %v1066_v35 = vld [vmem:[#allocation8 + $0x140] sm:$0xff]  ;;  %v2312_v62 = vpack.c.bf16 %v1069_v57, %v1068_v54  ;;  %v2282_v63 = vpack.c.bf16 %v1037_v61, %v1036_v58 }
 0x227   :  { %v2276_v36 = vpack.c.bf16 %v1051_v43, %v1050_v34 }
 0x228   :  { %2028 = vmatmul.mubr.msk.f32.vlgmr.msra.gmra.mrb[6].mxu1 %vm778_vm8, %v777_v38  ;;  %v1067_v38 = vld [vmem:[#allocation8 + $0x148] sm:$0xff] }
 0x229   :  { %2295 = vmatpush3.bf16.msra.mxu1 %v2292_v55  ;;  %2267 = vmatpush3.bf16.msra.mxu0 %v2266_v8  ;;  %v2308_v42 = vpack.c.bf16 %v1067_v38, %v1066_v35  ;;  %v2280_v55 = vpack.c.bf16 %v1053_v51, %v1052_v46  ;;  %v1071_v8 = vld [vmem:[#allocation8 + $0x168] sm:$0xff] }
 0x22a   :  { %2297 = vmatprep.subr.bf16.mxu1 %v2296_v7  ;;  %2269 = vmatprep.subr.bf16.mxu0 %v2268_v13  ;;  %v2316_v12 = vpack.c.bf16 %v1071_v8, %v1070_v5  ;;  %v2286_v13 = vpack.c.bf16 %v1039_v10, %v1038_v9 }
 0x22d   :  { %2299 = vmatpush3.bf16.msra.mxu1 %v2296_v7  ;;  %2271 = vmatpush3.bf16.msra.mxu0 %v2270_v19  ;;  %v2284_v7 = vpack.c.bf16 %v1055_v3, %v1054_v2  ;;  %v1073_v19 = vld [vmem:[#allocation8 + $0x178] sm:$0xff] }
 0x22e   :  { %2301 = vmatprep.subr.bf16.mxu1 %v2300_v18  ;;  %2273 = vmatprep.subr.bf16.mxu0 %v2272_v25  ;;  %v2320_v23 = vpack.c.bf16 %v1073_v19, %v1072_v17  ;;  %v2290_v25 = vpack.c.bf16 %v1041_v22, %v1040_v20 }
 0x231   :  { %2303 = vmatpush3.bf16.msra.mxu1 %v2300_v18  ;;  %2275 = vmatpush3.bf16.msra.mxu0 %v2274_v33  ;;  %v2288_v18 = vpack.c.bf16 %v1057_v15, %v1056_v14 }
 0x232   :  { %2305 = vmatprep.subr.bf16.mxu1 %v2304_v32  ;;  %2277 = vmatprep.subr.bf16.mxu0 %v2276_v36  ;;  %v940_v36 = vsub.s32 1, %v2611_v41 }
 0x235   :  { %2307 = vmatpush3.bf16.msra.mxu1 %v2304_v32  ;;  %2279 = vmatpush3.bf16.msra.mxu0 %v2278_v44  ;;  %v948_v44 = vsub.s32 2, %v2611_v41 }
 0x236   :  { %2309 = vmatprep.subr.bf16.mxu1 %v2308_v42  ;;  %2281 = vmatprep.subr.bf16.mxu0 %v2280_v55 }
 0x239   :  { %2311 = vmatpush3.bf16.msra.mxu1 %v2308_v42  ;;  %2283 = vmatpush3.bf16.msra.mxu0 %v2282_v63 }
 0x23a   :  { %2313 = vmatprep.subr.bf16.mxu1 %v2312_v62  ;;  %2285 = vmatprep.subr.bf16.mxu0 %v2284_v7 }
 0x23d   :  { %2315 = vmatpush3.bf16.msra.mxu1 %v2312_v62  ;;  %2287 = vmatpush3.bf16.msra.mxu0 %v2286_v13 }
 0x23e   :  { %2317 = vmatprep.subr.bf16.mxu1 %v2316_v12  ;;  %2289 = vmatprep.subr.bf16.mxu0 %v2288_v18 }
 0x241   :  { %2319 = vmatpush3.bf16.msra.mxu1 %v2316_v12  ;;  %2291 = vmatpush3.bf16.msra.mxu0 %v2290_v25 }
 0x242   :  { %2321 = vmatprep.subr.bf16.mxu1 %v2320_v23  ;;  %2324 = vmatprep.subr.bf16.mxu0 %v2503_v49 }
 0x245   :  { %2323 = vmatpush3.bf16.msra.mxu1 %v2320_v23 }
 0x246   :  { %2348 = vmatprep.subr.bf16.mxu1 %v2503_v49 }
 0x2f7   :  { %v848_v27 = vpop.f32.mrb[10].mxu0 }
 0x2f8   :  { %v2024_v28 = vpop.f32.mrb[11].mxu0 }
 0x2fb   :  { %v921_v31 = vpop.f32.mrb[6].mxu1 }
 0x2fc   :  { %v922_v32 = vadd.f32 1e-05, %v921_v31  ;;  %v2029_v33 = vpop.f32.mrb[7].mxu1 }
 0x2fe   :  { %2383 = vrsqrt.f32 %v922_v32 }
 0x308   :  { %v2384_v34 = vpop.eup %2383 }
 0x309   :  { %v927_v43 = vrot.slane %v2384_v34, 7 }
 0x30b   :  { %v929_v35 = vmul.f32 %v927_v43, %v2753_v26 }
 0x30d   :  { %v931_v38 = vrot.slane %v929_v35, 1  ;;  %v941_v40 = vrot.slane %v929_v35, %v940_v36 }
 0x30f   :  { %v933_v39 = vmul.f32 %v931_v38, %v848_v27  ;;  %v942_v51 = vmul.f32 %v941_v40, %v2756_v37  ;;  %v943_v54 = vmul.f32 %v941_v40, %v2758_v45  ;;  %v944_v55 = vmul.f32 %v941_v40, %v2762_v60 }
 0x310   :  { %v945_v57 = vmul.f32 %v941_v40, %v2770_v4 }
 0x311   :  { %v935_v42 = vrot.slane %v933_v39, 6 }
 0x313   :  { %v937_v46 = vsub.f32 %v2753_v26, %v935_v42 }
 0x315   :  { %v949_v58 = vrot.slane %v937_v46, %v948_v44 }
 0x317   :  { %v950_v61 = vadd.f32 %v949_v58, %v942_v51  ;;  %v951_v62 = vadd.f32 %v949_v58, %v943_v54  ;;  %v952_v63 = vadd.f32 %v949_v58, %v944_v55  ;;  %v953_v2 = vadd.f32 %v949_v58, %v945_v57 }
 0x319   :  { %v1668_v3 = vmul.f32 -1.442695, %v950_v61  ;;  %v1669_v5 = vmul.f32 -1.442695, %v951_v62  ;;  %v1670_v7 = vmul.f32 -1.442695, %v952_v63 }
 0x31a   :  { %v1671_v8 = vmul.f32 -1.442695, %v953_v2 }
 0x31b   :  { %2385 = vpow2.f32 %v1668_v3 }
 0x31c   :  { %2387 = vpow2.f32 %v1669_v5 }
 0x31d   :  { %2389 = vpow2.f32 %v1670_v7 }
 0x31e   :  { %2391 = vpow2.f32 %v1671_v8 }
 0x325   :  { %v2386_v37 = vpop.eup %2385 }
 0x326   :  { %v2388_v9 = vpop.eup %2387  ;;  %v966_v45 = vadd.f32 1.0, %v2386_v37 }
 0x327   :  { %v2390_v10 = vpop.eup %2389  ;;  %v967_v60 = vadd.f32 1.0, %v2388_v9 }
 0x328   :  { %v2392_v12 = vpop.eup %2391  ;;  %v968_v4 = vadd.f32 1.0, %v2390_v10  ;;  %2393 = vrcp.f32 %v966_v45 }
 0x329   :  { %v969_v13 = vadd.f32 1.0, %v2392_v12  ;;  %2395 = vrcp.f32 %v967_v60 }
 0x32a   :  { %2397 = vrcp.f32 %v968_v4 }
 0x32b   :  { %2399 = vrcp.f32 %v969_v13 }
 0x332   :  { %v2394_v14 = vpop.eup %2393 }
 0x333   :  { %v2396_v15 = vpop.eup %2395  ;;  %v978_v17 = vmul.f32 %v2394_v14, %v950_v61 }
 0x334   :  { %v2398_v18 = vpop.eup %2397  ;;  %v979_v19 = vmul.f32 %v2396_v15, %v951_v62 }
 0x335   :  { %v2400_v20 = vpop.eup %2399  ;;  %v980_v22 = vmul.f32 %v2398_v18, %v952_v63  ;;  %982 = vst [vmem:[#allocation2 + $0x1] sm:$0xff] %v978_v17 }
 0x336   :  { %v981_v23 = vmul.f32 %v2400_v20, %v953_v2  ;;  %983 = vst [vmem:[#allocation2 + $0x9] sm:$0xff] %v979_v19 }
 0x337   :  { %984 = vst [vmem:[#allocation2 + $0x19] sm:$0xff] %v980_v22 }
 0x338   :  { %985 = vst [vmem:[#allocation2 + $0x21] sm:$0xff] %v981_v23 }
 0x33c   :  { %v986_v25 = vld [vmem:[#allocation2] sm:$0xff] }
 0x33d   :  { %v987_v27 = vld [vmem:[#allocation2 + $0x8] sm:$0xff]  ;;  %v998_v28 = vrot.slane %v986_v25, 1  ;;  %v1012_v31 = vrot.slane %v986_v25, 2  ;;  %v988_v32 = vld [vmem:[#allocation2 + $0x10] sm:$0x3] }
 0x33e   :  { %v999_v33 = vrot.slane %v987_v27, 1  ;;  %v1013_v34 = vrot.slane %v987_v27, 2  ;;  %v1015_v43 = vrot.slane %v988_v32, 2  ;;  %v1001_v35 = vrot.slane %v988_v32, 1  ;;  %v989_v36 = vld [vmem:[#allocation2 + $0x18] sm:$0xff] }
 0x33f   :  { %v990_v38 = vld [vmem:[#allocation2 + $0x20] sm:$0xff]  ;;  %v1017_v39 = vrot.slane %v989_v36, 2  ;;  %v991_v40 = vld [vmem:[#allocation2 + $0x28] sm:$0x3]  ;;  %v1003_v57 = vrot.slane %v989_v36, 1 }
 0x340   :  { %v1000_v42 = vsel %vm360_vm0, %v998_v28, %v999_v33  ;;  %v1014_v44 = vsel %vm375_vm1, %v1012_v31, %v1013_v34  ;;  %v1016_v46 = vsel %vm375_vm1, %v1013_v34, %v1015_v43  ;;  %v1018_v51 = vrot.slane %v990_v38, 2 }
 0x341   :  { %1142 = vmatprep.mubr.f32.mxu0 %v1000_v42  ;;  %2062 = vmatprep.mubr.f32.mxu1 %v1014_v44  ;;  %v1020_v54 = vrot.slane %v991_v40, 2  ;;  %v1002_v55 = vsel %vm360_vm0, %v999_v33, %v1001_v35  ;;  %v1004_v58 = vrot.slane %v990_v38, 1  ;;  %v1006_v2 = vrot.slane %v991_v40, 1 }
 0x342   :  { %1143 = vmatmul.mubr.f32.vlgmr.msra.gmra.mrb[12].mxu0 %v986_v25  ;;  %2063 = vmatmul.mubr.f32.vlgmr.msra.gmra.mrb[8].mxu1 %v1016_v46  ;;  %v1019_v61 = vsel %vm375_vm1, %v1017_v39, %v1018_v51 }
 0x343   :  { %1147 = vmatprep.mubr.f32.mxu0 %v1002_v55  ;;  %2065 = vmatprep.mubr.f32.mxu1 %v1019_v61  ;;  %v1021_v62 = vsel %vm375_vm1, %v1018_v51, %v1020_v54  ;;  %v1005_v63 = vsel %vm360_vm0, %v1003_v57, %v1004_v58  ;;  %v1007_v50 = vsel %vm360_vm0, %v1004_v58, %v1006_v2 }
 0x344   :  { %2326 = vmatpush3.bf16.msk.msra.mxu0 %vm2621_vm4, %v2504_v53  ;;  %2350 = vmatpush3.bf16.msk.msra.mxu1 %vm2621_vm4, %v2504_v53 }
 0x345   :  { %2327 = vmatprep.subr.bf16.mxu0 %v2503_v49  ;;  %2351 = vmatprep.subr.bf16.mxu1 %v2503_v49 }
 0x346   :  { %1148 = vmatmul.mubr.f32.gmra.mrb[14].mxu0 %v987_v27  ;;  %2066 = vmatmul.mubr.f32.gmra.mrb[10].mxu1 %v1021_v62 }
 0x347   :  { %1152 = vmatprep.mubr.f32.mxu0 %v1005_v63  ;;  %2135 = vmatprep.mubr.msk.f32.mxu1 %vm2505_vm3, %v2502_v0 }
 0x348   :  { %2329 = vmatpush3.bf16.msk.msra.mxu0 %vm2639_vm7, %v2504_v53  ;;  %2353 = vmatpush3.bf16.msk.msra.mxu1 %vm2639_vm7, %v2504_v53 }
 0x349   :  { %2330 = vmatprep.subr.bf16.mxu0 %v2503_v49  ;;  %2354 = vmatprep.subr.bf16.mxu1 %v2503_v49 }
 0x34a   :  { %1153 = vmatmul.mubr.f32.gmra.mrb[16].mxu0 %v989_v36 }
 0x34b   :  { %1157 = vmatprep.mubr.f32.mxu0 %v1007_v50 }
 0x34c   :  { %2332 = vmatpush3.bf16.msk.msra.mxu0 %vm2655_vm10, %v2504_v53  ;;  %2356 = vmatpush3.bf16.msk.msra.mxu1 %vm2655_vm10, %v2504_v53 }
 0x34d   :  { %2333 = vmatprep.subr.bf16.mxu0 %v2503_v49  ;;  %2357 = vmatprep.subr.bf16.mxu1 %v2503_v49 }
 0x34e   :  { %1158 = vmatmul.mubr.f32.gmra.mrb[18].mxu0 %v990_v38 }
 0x34f   :  { %2100 = vmatprep.mubr.msk.f32.mxu0 %vm2505_vm3, %v2502_v0 }
 0x350   :  { %2335 = vmatpush3.bf16.msk.msra.mxu0 %vm2671_vm13, %v2504_v53  ;;  %2359 = vmatpush3.bf16.msk.msra.mxu1 %vm2671_vm13, %v2504_v53 }
 0x351   :  { %2336 = vmatprep.subr.bf16.mxu0 %v2503_v49  ;;  %2360 = vmatprep.subr.bf16.mxu1 %v2503_v49 }
 0x354   :  { %2338 = vmatpush3.bf16.msk.msra.mxu0 %vm2687_vm2, %v2504_v53  ;;  %2362 = vmatpush3.bf16.msk.msra.mxu1 %vm2687_vm2, %v2504_v53 }
 0x355   :  { %2339 = vmatprep.subr.bf16.mxu0 %v2503_v49  ;;  %2363 = vmatprep.subr.bf16.mxu1 %v2503_v49 }
 0x358   :  { %2341 = vmatpush3.bf16.msk.msra.mxu0 %vm2703_vm6, %v2504_v53  ;;  %2365 = vmatpush3.bf16.msk.msra.mxu1 %vm2703_vm6, %v2504_v53 }
 0x359   :  { %2342 = vmatprep.subr.bf16.mxu0 %v2503_v49  ;;  %2366 = vmatprep.subr.bf16.mxu1 %v2503_v49 }
 0x35c   :  { %2344 = vmatpush3.bf16.msk.msra.mxu0 %vm2719_vm11, %v2504_v53  ;;  %2368 = vmatpush3.bf16.msk.msra.mxu1 %vm2719_vm11, %v2504_v53 }
 0x35d   :  { %2345 = vmatprep.subr.bf16.mxu0 %v2503_v49  ;;  %2369 = vmatprep.subr.bf16.mxu1 %v2503_v49 }
 0x360   :  { %2347 = vmatpush3.bf16.msk.msra.mxu0 %vm2733_vm15, %v2504_v53  ;;  %2371 = vmatpush3.bf16.msk.msra.mxu1 %vm2733_vm15, %v2504_v53 }
 0x361   :  { %2138 = vmatprep.subr.mxu0 %v2502_v0  ;;  %2143 = vmatprep.subr.mxu1 %v2502_v0 }
 0x415   :  { %v1842_v1 = vpop.f32.mrb[12].mxu0  ;;  %v2064_v6 = vpop.f32.mrb[8].mxu1 }
 0x416   :  { %v1843_v16 = vpop.f32.mrb[13].mxu0  ;;  %v1229_v49 = vpop.f32.mrb[9].mxu1 }
 0x417   :  { %v1844_v21 = vadd.f32 %v1843_v16, %v1842_v1 }
 0x419   :  { %v1145_v3 = vadd.f32 %v1844_v21, %v1077_v11  ;;  %v1845_v5 = vpop.f32.mrb[14].mxu0  ;;  %v2067_v7 = vpop.f32.mrb[10].mxu1  ;;  %v1575_v21 = vsub.s32 4, %v2611_v41 }
 0x41a   :  { %v1846_v8 = vpop.f32.mrb[15].mxu0  ;;  %v1239_v37 = vpop.f32.mrb[11].mxu1 }
 0x41b   :  { %v2882_v24 = vadd.f32 %v1229_v49, %v1145_v3  ;;  %v1847_v53 = vadd.f32 %v1846_v8, %v1845_v5 }
 0x41d   :  { %v1150_v9 = vadd.f32 %v1847_v53, %v1077_v11  ;;  %v1848_v45 = vpop.f32.mrb[16].mxu0  ;;  %v1257_v19 = vmul.f32 %v2882_v24, %v2882_v24 }
 0x41e   :  { %v1849_v10 = vpop.f32.mrb[17].mxu0 }
 0x41f   :  { %v2884_v60 = vadd.f32 %v2064_v6, %v1150_v9  ;;  %v1850_v12 = vadd.f32 %v1849_v10, %v1848_v45 }
 0x421   :  { %v1155_v4 = vadd.f32 %v1850_v12, %v1077_v11  ;;  %v1851_v13 = vpop.f32.mrb[18].mxu0  ;;  %v1258_v15 = vmul.f32 %v2884_v60, %v2884_v60  ;;  %v1248_v20 = vadd.f32 %v2884_v60, %v2882_v24 }
 0x422   :  { %v1852_v14 = vpop.f32.mrb[19].mxu0 }
 0x423   :  { %v1240_v17 = vadd.f32 %v1239_v37, %v1155_v4  ;;  %v1853_v18 = vadd.f32 %v1852_v14, %v1851_v13  ;;  %v1261_v25 = vadd.f32 %v1258_v15, %v1257_v19  ;;  %v1583_v37 = vsub.s32 5, %v2611_v41 }
 0x425   :  { %v1259_v22 = vmul.f32 %v1240_v17, %v1240_v17  ;;  %v1160_v23 = vadd.f32 %v1853_v18, %v1077_v11  ;;  %v1249_v27 = vadd.f32 %v1248_v20, %v1240_v17 }
 0x427   :  { %v1245_v28 = vadd.f32 %v2067_v7, %v1160_v23  ;;  %v1262_v31 = vadd.f32 %v1261_v25, %v1259_v22 }
 0x429   :  { %v1250_v32 = vadd.f32 %v1249_v27, %v1245_v28  ;;  %v1260_v33 = vmul.f32 %v1245_v28, %v1245_v28 }
 0x42b   :  { %v1251_v34 = vrot.slane %v1250_v32, 4  ;;  %v1263_v43 = vadd.f32 %v1262_v31, %v1260_v33 }
 0x42d   :  { %v1252_v35 = vadd.f32 %v1251_v34, %v1250_v32  ;;  %v1264_v36 = vrot.slane %v1263_v43, 4 }
 0x42f   :  { %v1253_v38 = vrot.slane %v1252_v35, 2  ;;  %v1265_v39 = vadd.f32 %v1264_v36, %v1263_v43 }
 0x431   :  { %v1254_v40 = vadd.f32 %v1253_v38, %v1252_v35  ;;  %v1266_v42 = vrot.slane %v1265_v39, 2 }
 0x433   :  { %v1255_v44 = vrot.slane %v1254_v40, 1  ;;  %v1267_v46 = vadd.f32 %v1266_v42, %v1265_v39 }
 0x435   :  { %v1256_v51 = vadd.f32 %v1255_v44, %v1254_v40  ;;  %v1268_v54 = vrot.slane %v1267_v46, 1 }
 0x437   :  { %2101 = vmatmul.mubr.f32.vlgmr.msra.gmra.mrb[20].mxu0 %v1256_v51  ;;  %v1269_v55 = vadd.f32 %v1268_v54, %v1267_v46 }
 0x438   :  { %2139 = vmatpush3.msk.msra.mxu0 %vm2782_vm5, %v2506_v30  ;;  %2140 = vmatprep.mubr.msk.f32.mxu0 %vm2505_vm3, %v2502_v0 }
 0x439   :  { %2136 = vmatmul.mubr.f32.vlgmr.msra.gmra.mrb[12].mxu1 %v1269_v55 }
 0x43a   :  { %2144 = vmatpush3.msk.msra.mxu1 %vm2782_vm5, %v2506_v30  ;;  %2145 = vmatprep.mubr.msk.f32.mxu1 %vm2505_vm3, %v2502_v0 }
 0x50a   :  { %v1336_v57 = vpop.f32.mrb[20].mxu0 }
 0x50b   :  { %v1340_v58 = vmul.f32 0.001953125, %v1336_v57  ;;  %v2102_v61 = vpop.f32.mrb[21].mxu0 }
 0x50c   :  { %v1407_v62 = vpop.f32.mrb[12].mxu1 }
 0x50d   :  { %v1412_v63 = vmul.f32 %v1340_v58, %v1340_v58  ;;  %v1411_v2 = vmul.f32 0.001953125, %v1407_v62  ;;  %v2137_v50 = vpop.f32.mrb[13].mxu1  ;;  %2141 = vmatmul.mubr.msk.f32.vlgmr.msra.gmra.mrb[22].mxu0 %vm778_vm8, %v1340_v58 }
 0x50f   :  { %v1413_v59 = vsub.f32 %v1411_v2, %v1412_v63 }
 0x511   :  { %2146 = vmatmul.mubr.msk.f32.vlgmr.msra.gmra.mrb[14].mxu1 %vm778_vm8, %v1413_v59 }
 0x5e0   :  { %v1483_v1 = vpop.f32.mrb[22].mxu0 }
 0x5e1   :  { %v2142_v6 = vpop.f32.mrb[23].mxu0 }
 0x5e4   :  { %v1556_v11 = vpop.f32.mrb[14].mxu1 }
 0x5e5   :  { %v1557_v29 = vadd.f32 1e-05, %v1556_v11  ;;  %v2147_v30 = vpop.f32.mrb[15].mxu1 }
 0x5e7   :  { %2401 = vrsqrt.f32 %v1557_v29 }
 0x5f1   :  { %v2402_v16 = vpop.eup %2401 }
 0x5f2   :  { %v1562_v0 = vrot.slane %v2402_v16, 4 }
 0x5f4   :  { %v1564_v49 = vmul.f32 %v1562_v0, %v2753_v26 }
 0x5f6   :  { %v1566_v3 = vrot.slane %v1564_v49, 4  ;;  %v1576_v7 = vrot.slane %v1564_v49, %v1575_v21 }
 0x5f8   :  { %v1568_v5 = vmul.f32 %v1566_v3, %v1483_v1  ;;  %v1577_v9 = vmul.f32 %v1576_v7, %v2882_v24  ;;  %v1578_v10 = vmul.f32 %v1576_v7, %v2884_v60  ;;  %v1579_v12 = vmul.f32 %v1576_v7, %v1240_v17 }
 0x5f9   :  { %v1580_v4 = vmul.f32 %v1576_v7, %v1245_v28 }
 0x5fa   :  { %v1570_v8 = vrot.slane %v1568_v5, 3 }
 0x5fc   :  { %v1572_v53 = vsub.f32 %v2753_v26, %v1570_v8 }
 0x5fe   :  { %v1584_v45 = vrot.slane %v1572_v53, %v1583_v37 }
 0x600   :  { %v1585_v13 = vadd.f32 %v1584_v45, %v1577_v9  ;;  %v1586_v14 = vadd.f32 %v1584_v45, %v1578_v10  ;;  %v1587_v15 = vadd.f32 %v1584_v45, %v1579_v12  ;;  %v1588_v18 = vadd.f32 %v1584_v45, %v1580_v4 }
 0x602   :  { %v1589_v19 = vadd.f32 %v1585_v13, %v2591_v47  ;;  %v1590_v20 = vadd.f32 %v1586_v14, %v2593_v48  ;;  %v1591_v41 = vadd.f32 %v1587_v15, %v2597_v52  ;;  %v1592_v26 = vadd.f32 %v1588_v18, %v2599_v56 }
 0x604   :  { %1593 = vst [vmem:[#allocation9] sm:$0xff] %v1589_v19  ;;  %1594 = vst [vmem:[#allocation9 + $0x8] sm:$0xff] %v1590_v20 }
 0x605   :  { %1595 = vst [vmem:[#allocation9 + $0x10] sm:$0xff] %v1591_v41  ;;  %1596 = vst [vmem:[#allocation9 + $0x18] sm:$0xff] %v1592_v26 }
 0x606   :  { %2480 = shalt.err (!%p2477_p0)
}
 0x607   :  { %s2481_s6 = scalar_lea.hbm %s2933_s4, 512 }
 0x608   :  { %p2482_p1 = scmp.ne.s32.totalorder %s2933_s4, %s2481_s6  ;;  %p2485_p2 = scmp.lt.u32.totalorder %s2481_s6, %s2933_s4 }
 0x60a   :  { %p2487_p3 = pnand %p2485_p2, %p2482_p1 }
 0x60c   :  { %2490 = shalt.err (!%p2487_p3)
}
 0x60d   :  { %1608 = dma.vmem_to_hbm [thread:$0]  %s1603_s26, 512, %s2933_s4, [#allocation5], %s2499_s27, %s2499_s27, %s2500_s28  }
 0x60e   :  { %2495 = dma.done.wait [#allocation5], 512  }
 0x60f   :  { %2496 = vsyncadd [#allocation5], 4294966784 }
 0x610   :  { %1612 = vsyncpa [#allocation4], 1 }
 0x611   :  { %1613 = vsyncpa [#allocation7], 1 }
 0x612   :  { %1614 = vsyncpa [#allocation5], 1 }

</bundles_post_ra>
